<compile_context>
chip_gen: v5e
topology: v5e:2x2
jax: 0.10.0
libtpu: 0.0.40
codegen_flags: <defaults>
</compile_context>

<pallas_src>
import jax
import jax.numpy as jnp
from jax.experimental import pallas as pl
from jax.experimental.pallas import tpu as pltpu

# ----------------------------- configuration -------------------------------

EMB_DIM = 8
NUM_TASKS = 2
NUM_SHARED = 1
NUM_SPECIFIC = 1
NUM_LAYERS = 2
EXPERT_HIDDEN = (32, 16)
GATE_HIDDEN = (8,)
TOWER_HIDDEN = (8,)

# name -> (vocab_size, column index in x)
CAT_FEATURES = {"c0": (10, 0), "c1": (10, 1)}
# name -> (unused, column index in x)
CON_FEATURES = {"f0": (1, 2)}
# name -> (vocab_size, (start_col, end_col)) padded id sequence
VARLEN_FEATURES = {"hist": (12, (3, 7))}

INPUT_DIM = EMB_DIM * (len(CAT_FEATURES) + len(VARLEN_FEATURES)) + len(CON_FEATURES)
NUM_EXPERTS = NUM_SPECIFIC * NUM_TASKS + NUM_SHARED


# ----------------------------- fused Pallas kernel --------------------------

def _stem_fused_kernel(*refs):
    """Entire STEM forward for one batch block; all intermediates live in VMEM."""
    T = NUM_TASKS
    E = NUM_EXPERTS
    H = EXPERT_HIDDEN[-1]

    it = iter(refs)
    x_ref = next(it)
    cat_tbls = [next(it) for _ in CAT_FEATURES]
    var_tbls = [next(it) for _ in VARLEN_FEATURES]
    layer_refs = []
    for _ in range(NUM_LAYERS):
        e_wbs = [(next(it), next(it)) for _ in EXPERT_HIDDEN]   # packed expert DNN
        g_wbs = [(next(it), next(it)) for _ in GATE_HIDDEN]     # packed gate DNN
        gWf = next(it)                                          # packed gate_final (no bias)
        layer_refs.append((e_wbs, g_wbs, gWf))
    t_wbs = [(next(it), next(it)) for _ in TOWER_HIDDEN]        # packed towers
    tWf = next(it)                                              # packed tower_final (no bias)
    o_ref = next(it)

    x = x_ref[...]                     # (BB, num_cols) float32
    BB = x.shape[0]

    def packed_dnn(h, wbs):
        # y = relu(h @ W + b); eval-mode BN already folded into W/b.
        for w_ref, b_ref in wbs:
            h = jnp.dot(h, w_ref[...], preferred_element_type=jnp.float32) + b_ref[...]
            h = jnp.maximum(h, 0.0)
        return h

    # ---- embeddings in-kernel: one-hot @ table (gather on the MXU, stays in VMEM)
    cat_embs = []
    for tbl_ref, (vocab, col) in zip(cat_tbls, CAT_FEATURES.values()):
        idx = x[:, col:col + 1].astype(jnp.int32)                      # (BB, 1)
        iota = jax.lax.broadcasted_iota(jnp.int32, (BB, vocab), 1)
        onehot = (idx == iota).astype(jnp.float32)                     # (BB, vocab)
        cat_embs.append(jnp.dot(onehot, tbl_ref[...],
                                preferred_element_type=jnp.float32))   # (BB, EMB*(T+1))

    con = jnp.concatenate([x[:, col:col + 1]
                           for (_, col) in CON_FEATURES.values()], axis=1)

    # TODO(synk): varlen pooling assumed to be masked mean over ids > 0
    # (stem_varlen_embedding_lookup / stem_get_varlen_pooling_list not provided).
    var_embs = []
    for tbl_ref, (vocab, (s, e_)) in zip(var_tbls, VARLEN_FEATURES.values()):
        iota = jax.lax.broadcasted_iota(jnp.int32, (BB, vocab), 1)
        counts = jnp.zeros((BB, vocab), jnp.float32)
        denom = jnp.zeros((BB, 1), jnp.float32)
        for c in range(s, e_):
            ids_c = x[:, c:c + 1].astype(jnp.int32)
            m = (ids_c > 0).astype(jnp.float32)
            counts = counts + (ids_c == iota).astype(jnp.float32) * m
            denom = denom + m
        pooled = jnp.dot(counts, tbl_ref[...], preferred_element_type=jnp.float32)
        var_embs.append(pooled / jnp.maximum(denom, 1.0))

    # per-head inputs: [cat_embed[i], con, varlen_embed[i]]  -> (BB, INPUT_DIM)
    xs = []
    for i in range(T + 1):
        parts = [emb[:, i * EMB_DIM:(i + 1) * EMB_DIM] for emb in cat_embs]
        parts.append(con)
        parts += [emb[:, i * EMB_DIM:(i + 1) * EMB_DIM] for emb in var_embs]
        xs.append(jnp.concatenate(parts, axis=1))

    # ---- stacked STEM layers (packed block-diagonal matmuls) ----
    expert_input_idx = ([i for i in range(T) for _ in range(NUM_SPECIFIC)]
                        + [T] * NUM_SHARED)
    for e_wbs, g_wbs, gWf in layer_refs:
        # all experts at once: (BB, E*Din) @ block-diag -> (BB, E*H)
        xp = jnp.concatenate([xs[idx] for idx in expert_input_idx], axis=1)
        expert = packed_dnn(xp, e_wbs)                                  # (BB, E*H)
        # all gates at once; gate input is x[i] + x[-1]
        gp = jnp.concatenate([xs[i] + xs[T] for i in range(T + 1)], axis=1)
        gm = packed_dnn(gp, g_wbs)                                      # (BB, (T+1)*GH)
        logits = jnp.dot(gm, gWf[...], preferred_element_type=jnp.float32)  # (BB, (T+1)*E)

        new_xs = []
        for i in range(T + 1):
            z = logits[:, i * E:(i + 1) * E]
            z = z - jnp.max(z, axis=-1, keepdims=True)
            ez = jnp.exp(z)
            g = ez * pl.reciprocal(jnp.sum(ez, axis=-1, keepdims=True), approx=True)
            out = g[:, 0:1] * expert[:, 0:H]
            for e in range(1, E):
                out = out + g[:, e:e + 1] * expert[:, e * H:(e + 1) * H]
            new_xs.append(out)                                          # (BB, H)
        xs = new_xs

    # ---- task towers + sigmoid heads (packed) ----
    tp = jnp.concatenate([xs[i] for i in range(T)], axis=1)             # (BB, T*H)
    th = packed_dnn(tp, t_wbs)                                          # (BB, T*TH)
    head = jnp.dot(th, tWf[...], preferred_element_type=jnp.float32)    # (BB, T)
    o_ref[...] = jax.nn.sigmoid(head).astype(o_ref.dtype)


def stem_forward(x, packed, block_b=256):
    """Single fused pallas_call; batch grid is parallel (shards across TCs on v7x)."""
    B = x.shape[0]
    bb = B if B <= block_b else block_b
    assert B % bb == 0, "batch must be divisible by the batch block size"
    grid = (B // bb,)

    in_specs = [pl.BlockSpec((bb, x.shape[1]), lambda i: (i, 0))]
    # weights / tables: whole array resident, same block for every grid step
    in_specs += [pl.BlockSpec(p.shape, lambda i: (0, 0)) for p in packed]
    out_spec = pl.BlockSpec((bb, NUM_TASKS), lambda i: (i, 0))

    return pl.pallas_call(
        _stem_fused_kernel,
        out_shape=jax.ShapeDtypeStruct((B, NUM_TASKS), jnp.float32),
        grid=grid,
        in_specs=in_specs,
        out_specs=out_spec,
        compiler_params=pltpu.CompilerParams(
            dimension_semantics=("parallel",),
        ),
    )(x, *packed)


# ----------------------------- parameters ----------------------------------

_BN_SCALE = 1.0 / jnp.sqrt(1.0 + 1e-5)  # eval-mode BN with default running stats


def _linear_params(key, fan_in, fan_out, std=0.05, fold_bn=True):
    kw, _ = jax.random.split(key)
    w = jax.random.normal(kw, (fan_in, fan_out), jnp.float32) * std
    b = jnp.zeros((1, fan_out), jnp.float32)
    if fold_bn:
        w = w * _BN_SCALE
        b = b * _BN_SCALE
    return (w, b)


def _dnn_params(key, in_dim, hidden_units, std=0.05):
    dims = [in_dim] + list(hidden_units)
    keys = jax.random.split(key, len(hidden_units))
    return [_linear_params(k, di, do, std)
            for k, (di, do) in zip(keys, zip(dims[:-1], dims[1:]))]


def init_params(key):
    T = NUM_TASKS
    keys = iter(jax.random.split(key, 256))
    params = {}
    params["emb"] = {
        f: jax.random.normal(next(keys), (v, EMB_DIM * (T + 1)), jnp.float32) * 1e-2
        for f, (v, _) in CAT_FEATURES.items()
    }
    params["varlen_emb"] = {
        f: jax.random.normal(next(keys), (v, EMB_DIM * (T + 1)), jnp.float32) * 1e-2
        for f, (v, _) in VARLEN_FEATURES.items()
    }
    layers = []
    for l in range(NUM_LAYERS):
        din = INPUT_DIM if l == 0 else EXPERT_HIDDEN[-1]
        lp = {
            "specific": [
                [_dnn_params(next(keys), din, EXPERT_HIDDEN) for _ in range(NUM_SPECIFIC)]
                for _ in range(T)
            ],
            "shared": [_dnn_params(next(keys), din, EXPERT_HIDDEN) for _ in range(NUM_SHARED)],
            "gate": [_dnn_params(next(keys), din, GATE_HIDDEN) for _ in range(T + 1)],
            "gate_final": [
                jax.random.normal(next(keys), (GATE_HIDDEN[-1], NUM_EXPERTS), jnp.float32) * 0.05
                for _ in range(T + 1)
            ],
        }
        layers.append(lp)
    params["stem_layers"] = layers
    params["tower"] = [_dnn_params(next(keys), EXPERT_HIDDEN[-1], TOWER_HIDDEN) for _ in range(T)]
    params["tower_final"] = [
        jax.random.normal(next(keys), (TOWER_HIDDEN[-1], 1), jnp.float32) * 0.05
        for _ in range(T)
    ]
    return params


# ----------------------------- weight packing -------------------------------

def _block_diag(mats):
    rows = sum(m.shape[0] for m in mats)
    cols = sum(m.shape[1] for m in mats)
    out = jnp.zeros((rows, cols), jnp.float32)
    r = c = 0
    for m in mats:
        out = out.at[r:r + m.shape[0], c:c + m.shape[1]].set(m)
        r += m.shape[0]
        c += m.shape[1]
    return out


def pack_params(params):
    """Pack per-expert / per-gate / per-tower weights into block-diagonal matrices
    so each group runs as one wide, lane-dense matmul inside the fused kernel."""
    T = NUM_TASKS
    packed = []
    packed += [params["emb"][f] for f in CAT_FEATURES]
    packed += [params["varlen_emb"][f] for f in VARLEN_FEATURES]
    for lp in params["stem_layers"]:
        experts = ([lp["specific"][i][j] for i in range(T) for j in range(NUM_SPECIFIC)]
                   + [lp["shared"][k] for k in range(NUM_SHARED)])
        for l in range(len(EXPERT_HIDDEN)):
            packed.append(_block_diag([e[l][0] for e in experts]))
            packed.append(jnp.concatenate([e[l][1] for e in experts], axis=1))
        for l in range(len(GATE_HIDDEN)):
            packed.append(_block_diag([g[l][0] for g in lp["gate"]]))
            packed.append(jnp.concatenate([g[l][1] for g in lp["gate"]], axis=1))
        packed.append(_block_diag(lp["gate_final"]))
    for l in range(len(TOWER_HIDDEN)):
        packed.append(_block_diag([params["tower"][i][l][0] for i in range(T)]))
        packed.append(jnp.concatenate([params["tower"][i][l][1] for i in range(T)], axis=1))
    packed.append(_block_diag(params["tower_final"]))
    return packed


# ----------------------------- main -----------------------------------------

if __name__ == "__main__":
    key = jax.random.PRNGKey(0)
    k_params, k_cat, k_con, k_var = jax.random.split(key, 4)

    B = 8
    cat_cols = jax.random.randint(k_cat, (B, len(CAT_FEATURES)), 0, 10).astype(jnp.float32)
    con_col = jax.random.uniform(k_con, (B, len(CON_FEATURES)), jnp.float32)
    var_cols = jax.random.randint(k_var, (B, 4), 0, 12).astype(jnp.float32)
    x = jnp.concatenate([cat_cols, con_col, var_cols], axis=1)   # (8, 7)

    params = init_params(k_params)
    packed = pack_params(params)

    y = stem_forward(x, packed)
    jax.block_until_ready(y)
    assert y.shape == (B, NUM_TASKS), y.shape
    assert bool(jnp.all(jnp.isfinite(y)))
    print("KERNEL_OK")
</pallas_src>

<mosaic_0001>
module attributes {stable_mosaic.version = 11 : i64} {
  func.func @_stem_fused_kernel(%arg0: i32, %arg1: memref<8x7xf32, #tpu.memory_space<vmem>>, %arg2: memref<10x24xf32, #tpu.memory_space<vmem>>, %arg3: memref<10x24xf32, #tpu.memory_space<vmem>>, %arg4: memref<12x24xf32, #tpu.memory_space<vmem>>, %arg5: memref<75x96xf32, #tpu.memory_space<vmem>>, %arg6: memref<1x96xf32, #tpu.memory_space<vmem>>, %arg7: memref<96x48xf32, #tpu.memory_space<vmem>>, %arg8: memref<1x48xf32, #tpu.memory_space<vmem>>, %arg9: memref<75x24xf32, #tpu.memory_space<vmem>>, %arg10: memref<1x24xf32, #tpu.memory_space<vmem>>, %arg11: memref<24x9xf32, #tpu.memory_space<vmem>>, %arg12: memref<48x96xf32, #tpu.memory_space<vmem>>, %arg13: memref<1x96xf32, #tpu.memory_space<vmem>>, %arg14: memref<96x48xf32, #tpu.memory_space<vmem>>, %arg15: memref<1x48xf32, #tpu.memory_space<vmem>>, %arg16: memref<48x24xf32, #tpu.memory_space<vmem>>, %arg17: memref<1x24xf32, #tpu.memory_space<vmem>>, %arg18: memref<24x9xf32, #tpu.memory_space<vmem>>, %arg19: memref<32x16xf32, #tpu.memory_space<vmem>>, %arg20: memref<1x16xf32, #tpu.memory_space<vmem>>, %arg21: memref<16x2xf32, #tpu.memory_space<vmem>>, %arg22: memref<8x2xf32, #tpu.memory_space<vmem>>) attributes {dimension_semantics = [#tpu.dimension_semantics<parallel>], iteration_bounds = array<i64: 1>, scalar_prefetch = 0 : i64, scratch_operands = 0 : i64, tpu.core_type = #tpu.core_type<tc>, window_params = [{transform_indices = @transform_0, window_bounds = array<i64: 8, 7>}, {pipeline_mode = #tpu.pipeline_mode<synchronous>, transform_indices = @transform_1, window_bounds = array<i64: 10, 24>}, {pipeline_mode = #tpu.pipeline_mode<synchronous>, transform_indices = @transform_2, window_bounds = array<i64: 10, 24>}, {pipeline_mode = #tpu.pipeline_mode<synchronous>, transform_indices = @transform_3, window_bounds = array<i64: 12, 24>}, {pipeline_mode = #tpu.pipeline_mode<synchronous>, transform_indices = @transform_4, window_bounds = array<i64: 75, 96>}, {pipeline_mode = #tpu.pipeline_mode<synchronous>, transform_indices = @transform_5, window_bounds = array<i64: 1, 96>}, {pipeline_mode = #tpu.pipeline_mode<synchronous>, transform_indices = @transform_6, window_bounds = array<i64: 96, 48>}, {pipeline_mode = #tpu.pipeline_mode<synchronous>, transform_indices = @transform_7, window_bounds = array<i64: 1, 48>}, {pipeline_mode = #tpu.pipeline_mode<synchronous>, transform_indices = @transform_8, window_bounds = array<i64: 75, 24>}, {pipeline_mode = #tpu.pipeline_mode<synchronous>, transform_indices = @transform_9, window_bounds = array<i64: 1, 24>}, {pipeline_mode = #tpu.pipeline_mode<synchronous>, transform_indices = @transform_10, window_bounds = array<i64: 24, 9>}, {pipeline_mode = #tpu.pipeline_mode<synchronous>, transform_indices = @transform_11, window_bounds = array<i64: 48, 96>}, {pipeline_mode = #tpu.pipeline_mode<synchronous>, transform_indices = @transform_12, window_bounds = array<i64: 1, 96>}, {pipeline_mode = #tpu.pipeline_mode<synchronous>, transform_indices = @transform_13, window_bounds = array<i64: 96, 48>}, {pipeline_mode = #tpu.pipeline_mode<synchronous>, transform_indices = @transform_14, window_bounds = array<i64: 1, 48>}, {pipeline_mode = #tpu.pipeline_mode<synchronous>, transform_indices = @transform_15, window_bounds = array<i64: 48, 24>}, {pipeline_mode = #tpu.pipeline_mode<synchronous>, transform_indices = @transform_16, window_bounds = array<i64: 1, 24>}, {pipeline_mode = #tpu.pipeline_mode<synchronous>, transform_indices = @transform_17, window_bounds = array<i64: 24, 9>}, {pipeline_mode = #tpu.pipeline_mode<synchronous>, transform_indices = @transform_18, window_bounds = array<i64: 32, 16>}, {pipeline_mode = #tpu.pipeline_mode<synchronous>, transform_indices = @transform_19, window_bounds = array<i64: 1, 16>}, {pipeline_mode = #tpu.pipeline_mode<synchronous>, transform_indices = @transform_20, window_bounds = array<i64: 16, 2>}, {transform_indices = @transform_21, window_bounds = array<i64: 8, 2>}]} {
    %c0 = arith.constant 0 : index
    %c0_0 = arith.constant 0 : index
    %0 = vector.load %arg1[%c0, %c0_0] : memref<8x7xf32, #tpu.memory_space<vmem>>, vector<8x7xf32>
    %1 = vector.extract_strided_slice %0 {offsets = [0, 0], sizes = [8, 1], strides = [1, 1]} : vector<8x7xf32> to vector<8x1xf32>
    %2 = arith.fptosi %1 : vector<8x1xf32> to vector<8x1xi32>
    %3 = tpu.iota {dimensions = array<i32: 1>} : vector<8x10xi32>
    %4 = vector.broadcast %2 : vector<8x1xi32> to vector<8x10xi32>
    %5 = arith.cmpi eq, %4, %3 : vector<8x10xi32>
    %6 = arith.extui %5 : vector<8x10xi1> to vector<8x10xi32>
    %7 = arith.sitofp %6 : vector<8x10xi32> to vector<8x10xf32>
    %c0_1 = arith.constant 0 : index
    %c0_2 = arith.constant 0 : index
    %8 = vector.load %arg2[%c0_1, %c0_2] : memref<10x24xf32, #tpu.memory_space<vmem>>, vector<10x24xf32>
    %cst = arith.constant dense<0.000000e+00> : vector<8x24xf32>
    %9 = tpu.matmul %7, %8, %cst {dimension_numbers = #tpu.dot_dimension_numbers<[1], [0], [0], [1], [0, 0, 1, 1], [], []>} : vector<8x10xf32>, vector<10x24xf32>, vector<8x24xf32> -> vector<8x24xf32>
    %10 = vector.extract_strided_slice %0 {offsets = [0, 1], sizes = [8, 1], strides = [1, 1]} : vector<8x7xf32> to vector<8x1xf32>
    %11 = arith.fptosi %10 : vector<8x1xf32> to vector<8x1xi32>
    %12 = tpu.iota {dimensions = array<i32: 1>} : vector<8x10xi32>
    %13 = vector.broadcast %11 : vector<8x1xi32> to vector<8x10xi32>
    %14 = arith.cmpi eq, %13, %12 : vector<8x10xi32>
    %15 = arith.extui %14 : vector<8x10xi1> to vector<8x10xi32>
    %16 = arith.sitofp %15 : vector<8x10xi32> to vector<8x10xf32>
    %c0_3 = arith.constant 0 : index
    %c0_4 = arith.constant 0 : index
    %17 = vector.load %arg3[%c0_3, %c0_4] : memref<10x24xf32, #tpu.memory_space<vmem>>, vector<10x24xf32>
    %cst_5 = arith.constant dense<0.000000e+00> : vector<8x24xf32>
    %18 = tpu.matmul %16, %17, %cst_5 {dimension_numbers = #tpu.dot_dimension_numbers<[1], [0], [0], [1], [0, 0, 1, 1], [], []>} : vector<8x10xf32>, vector<10x24xf32>, vector<8x24xf32> -> vector<8x24xf32>
    %19 = vector.extract_strided_slice %0 {offsets = [0, 2], sizes = [8, 1], strides = [1, 1]} : vector<8x7xf32> to vector<8x1xf32>
    %20 = tpu.iota {dimensions = array<i32: 1>} : vector<8x12xi32>
    %cst_6 = arith.constant 0.000000e+00 : f32
    %21 = vector.broadcast %cst_6 : f32 to vector<8x12xf32>
    %cst_7 = arith.constant 0.000000e+00 : f32
    %22 = vector.broadcast %cst_7 : f32 to vector<8x1xf32>
    %23 = vector.extract_strided_slice %0 {offsets = [0, 3], sizes = [8, 1], strides = [1, 1]} : vector<8x7xf32> to vector<8x1xf32>
    %24 = arith.fptosi %23 : vector<8x1xf32> to vector<8x1xi32>
    %c0_i32 = arith.constant 0 : i32
    %25 = vector.broadcast %c0_i32 : i32 to vector<8x1xi32>
    %26 = arith.cmpi sgt, %24, %25 : vector<8x1xi32>
    %27 = arith.extui %26 : vector<8x1xi1> to vector<8x1xi32>
    %28 = arith.sitofp %27 : vector<8x1xi32> to vector<8x1xf32>
    %29 = vector.broadcast %24 : vector<8x1xi32> to vector<8x12xi32>
    %30 = arith.cmpi eq, %29, %20 : vector<8x12xi32>
    %31 = arith.extui %30 : vector<8x12xi1> to vector<8x12xi32>
    %32 = arith.sitofp %31 : vector<8x12xi32> to vector<8x12xf32>
    %33 = vector.broadcast %28 : vector<8x1xf32> to vector<8x12xf32>
    %34 = arith.mulf %32, %33 : vector<8x12xf32>
    %35 = arith.addf %21, %34 : vector<8x12xf32>
    %36 = arith.addf %22, %28 : vector<8x1xf32>
    %37 = vector.extract_strided_slice %0 {offsets = [0, 4], sizes = [8, 1], strides = [1, 1]} : vector<8x7xf32> to vector<8x1xf32>
    %38 = arith.fptosi %37 : vector<8x1xf32> to vector<8x1xi32>
    %c0_i32_8 = arith.constant 0 : i32
    %39 = vector.broadcast %c0_i32_8 : i32 to vector<8x1xi32>
    %40 = arith.cmpi sgt, %38, %39 : vector<8x1xi32>
    %41 = arith.extui %40 : vector<8x1xi1> to vector<8x1xi32>
    %42 = arith.sitofp %41 : vector<8x1xi32> to vector<8x1xf32>
    %43 = vector.broadcast %38 : vector<8x1xi32> to vector<8x12xi32>
    %44 = arith.cmpi eq, %43, %20 : vector<8x12xi32>
    %45 = arith.extui %44 : vector<8x12xi1> to vector<8x12xi32>
    %46 = arith.sitofp %45 : vector<8x12xi32> to vector<8x12xf32>
    %47 = vector.broadcast %42 : vector<8x1xf32> to vector<8x12xf32>
    %48 = arith.mulf %46, %47 : vector<8x12xf32>
    %49 = arith.addf %35, %48 : vector<8x12xf32>
    %50 = arith.addf %36, %42 : vector<8x1xf32>
    %51 = vector.extract_strided_slice %0 {offsets = [0, 5], sizes = [8, 1], strides = [1, 1]} : vector<8x7xf32> to vector<8x1xf32>
    %52 = arith.fptosi %51 : vector<8x1xf32> to vector<8x1xi32>
    %c0_i32_9 = arith.constant 0 : i32
    %53 = vector.broadcast %c0_i32_9 : i32 to vector<8x1xi32>
    %54 = arith.cmpi sgt, %52, %53 : vector<8x1xi32>
    %55 = arith.extui %54 : vector<8x1xi1> to vector<8x1xi32>
    %56 = arith.sitofp %55 : vector<8x1xi32> to vector<8x1xf32>
    %57 = vector.broadcast %52 : vector<8x1xi32> to vector<8x12xi32>
    %58 = arith.cmpi eq, %57, %20 : vector<8x12xi32>
    %59 = arith.extui %58 : vector<8x12xi1> to vector<8x12xi32>
    %60 = arith.sitofp %59 : vector<8x12xi32> to vector<8x12xf32>
    %61 = vector.broadcast %56 : vector<8x1xf32> to vector<8x12xf32>
    %62 = arith.mulf %60, %61 : vector<8x12xf32>
    %63 = arith.addf %49, %62 : vector<8x12xf32>
    %64 = arith.addf %50, %56 : vector<8x1xf32>
    %65 = vector.extract_strided_slice %0 {offsets = [0, 6], sizes = [8, 1], strides = [1, 1]} : vector<8x7xf32> to vector<8x1xf32>
    %66 = arith.fptosi %65 : vector<8x1xf32> to vector<8x1xi32>
    %c0_i32_10 = arith.constant 0 : i32
    %67 = vector.broadcast %c0_i32_10 : i32 to vector<8x1xi32>
    %68 = arith.cmpi sgt, %66, %67 : vector<8x1xi32>
    %69 = arith.extui %68 : vector<8x1xi1> to vector<8x1xi32>
    %70 = arith.sitofp %69 : vector<8x1xi32> to vector<8x1xf32>
    %71 = vector.broadcast %66 : vector<8x1xi32> to vector<8x12xi32>
    %72 = arith.cmpi eq, %71, %20 : vector<8x12xi32>
    %73 = arith.extui %72 : vector<8x12xi1> to vector<8x12xi32>
    %74 = arith.sitofp %73 : vector<8x12xi32> to vector<8x12xf32>
    %75 = vector.broadcast %70 : vector<8x1xf32> to vector<8x12xf32>
    %76 = arith.mulf %74, %75 : vector<8x12xf32>
    %77 = arith.addf %63, %76 : vector<8x12xf32>
    %78 = arith.addf %64, %70 : vector<8x1xf32>
    %c0_11 = arith.constant 0 : index
    %c0_12 = arith.constant 0 : index
    %79 = vector.load %arg4[%c0_11, %c0_12] : memref<12x24xf32, #tpu.memory_space<vmem>>, vector<12x24xf32>
    %cst_13 = arith.constant dense<0.000000e+00> : vector<8x24xf32>
    %80 = tpu.matmul %77, %79, %cst_13 {dimension_numbers = #tpu.dot_dimension_numbers<[1], [0], [0], [1], [0, 0, 1, 1], [], []>} : vector<8x12xf32>, vector<12x24xf32>, vector<8x24xf32> -> vector<8x24xf32>
    %cst_14 = arith.constant 1.000000e+00 : f32
    %81 = vector.broadcast %cst_14 : f32 to vector<8x1xf32>
    %82 = arith.maximumf %78, %81 : vector<8x1xf32>
    %83 = vector.broadcast %82 : vector<8x1xf32> to vector<8x24xf32>
    %84 = arith.divf %80, %83 : vector<8x24xf32>
    %85 = vector.extract_strided_slice %9 {offsets = [0, 0], sizes = [8, 8], strides = [1, 1]} : vector<8x24xf32> to vector<8x8xf32>
    %86 = vector.extract_strided_slice %18 {offsets = [0, 0], sizes = [8, 8], strides = [1, 1]} : vector<8x24xf32> to vector<8x8xf32>
    %87 = vector.extract_strided_slice %84 {offsets = [0, 0], sizes = [8, 8], strides = [1, 1]} : vector<8x24xf32> to vector<8x8xf32>
    %88 = tpu.concatenate %85, %86, %19, %87 in 1 : vector<8x8xf32>, vector<8x8xf32>, vector<8x1xf32>, vector<8x8xf32> -> vector<8x25xf32>
    %89 = vector.extract_strided_slice %9 {offsets = [0, 8], sizes = [8, 8], strides = [1, 1]} : vector<8x24xf32> to vector<8x8xf32>
    %90 = vector.extract_strided_slice %18 {offsets = [0, 8], sizes = [8, 8], strides = [1, 1]} : vector<8x24xf32> to vector<8x8xf32>
    %91 = vector.extract_strided_slice %84 {offsets = [0, 8], sizes = [8, 8], strides = [1, 1]} : vector<8x24xf32> to vector<8x8xf32>
    %92 = tpu.concatenate %89, %90, %19, %91 in 1 : vector<8x8xf32>, vector<8x8xf32>, vector<8x1xf32>, vector<8x8xf32> -> vector<8x25xf32>
    %93 = vector.extract_strided_slice %9 {offsets = [0, 16], sizes = [8, 8], strides = [1, 1]} : vector<8x24xf32> to vector<8x8xf32>
    %94 = vector.extract_strided_slice %18 {offsets = [0, 16], sizes = [8, 8], strides = [1, 1]} : vector<8x24xf32> to vector<8x8xf32>
    %95 = vector.extract_strided_slice %84 {offsets = [0, 16], sizes = [8, 8], strides = [1, 1]} : vector<8x24xf32> to vector<8x8xf32>
    %96 = tpu.concatenate %93, %94, %19, %95 in 1 : vector<8x8xf32>, vector<8x8xf32>, vector<8x1xf32>, vector<8x8xf32> -> vector<8x25xf32>
    %97 = tpu.concatenate %88, %92, %96 in 1 : vector<8x25xf32>, vector<8x25xf32>, vector<8x25xf32> -> vector<8x75xf32>
    %c0_15 = arith.constant 0 : index
    %c0_16 = arith.constant 0 : index
    %98 = vector.load %arg5[%c0_15, %c0_16] : memref<75x96xf32, #tpu.memory_space<vmem>>, vector<75x96xf32>
    %cst_17 = arith.constant dense<0.000000e+00> : vector<8x96xf32>
    %99 = tpu.matmul %97, %98, %cst_17 {dimension_numbers = #tpu.dot_dimension_numbers<[1], [0], [0], [1], [0, 0, 1, 1], [], []>} : vector<8x75xf32>, vector<75x96xf32>, vector<8x96xf32> -> vector<8x96xf32>
    %c0_18 = arith.constant 0 : index
    %c0_19 = arith.constant 0 : index
    %100 = vector.load %arg6[%c0_18, %c0_19] : memref<1x96xf32, #tpu.memory_space<vmem>>, vector<1x96xf32>
    %101 = vector.broadcast %100 : vector<1x96xf32> to vector<8x96xf32>
    %102 = arith.addf %99, %101 : vector<8x96xf32>
    %cst_20 = arith.constant 0.000000e+00 : f32
    %103 = vector.broadcast %cst_20 : f32 to vector<8x96xf32>
    %104 = arith.maximumf %102, %103 : vector<8x96xf32>
    %c0_21 = arith.constant 0 : index
    %c0_22 = arith.constant 0 : index
    %105 = vector.load %arg7[%c0_21, %c0_22] : memref<96x48xf32, #tpu.memory_space<vmem>>, vector<96x48xf32>
    %cst_23 = arith.constant dense<0.000000e+00> : vector<8x48xf32>
    %106 = tpu.matmul %104, %105, %cst_23 {dimension_numbers = #tpu.dot_dimension_numbers<[1], [0], [0], [1], [0, 0, 1, 1], [], []>} : vector<8x96xf32>, vector<96x48xf32>, vector<8x48xf32> -> vector<8x48xf32>
    %c0_24 = arith.constant 0 : index
    %c0_25 = arith.constant 0 : index
    %107 = vector.load %arg8[%c0_24, %c0_25] : memref<1x48xf32, #tpu.memory_space<vmem>>, vector<1x48xf32>
    %108 = vector.broadcast %107 : vector<1x48xf32> to vector<8x48xf32>
    %109 = arith.addf %106, %108 : vector<8x48xf32>
    %cst_26 = arith.constant 0.000000e+00 : f32
    %110 = vector.broadcast %cst_26 : f32 to vector<8x48xf32>
    %111 = arith.maximumf %109, %110 : vector<8x48xf32>
    %112 = arith.addf %88, %96 : vector<8x25xf32>
    %113 = arith.addf %92, %96 : vector<8x25xf32>
    %114 = arith.addf %96, %96 : vector<8x25xf32>
    %115 = tpu.concatenate %112, %113, %114 in 1 : vector<8x25xf32>, vector<8x25xf32>, vector<8x25xf32> -> vector<8x75xf32>
    %c0_27 = arith.constant 0 : index
    %c0_28 = arith.constant 0 : index
    %116 = vector.load %arg9[%c0_27, %c0_28] : memref<75x24xf32, #tpu.memory_space<vmem>>, vector<75x24xf32>
    %cst_29 = arith.constant dense<0.000000e+00> : vector<8x24xf32>
    %117 = tpu.matmul %115, %116, %cst_29 {dimension_numbers = #tpu.dot_dimension_numbers<[1], [0], [0], [1], [0, 0, 1, 1], [], []>} : vector<8x75xf32>, vector<75x24xf32>, vector<8x24xf32> -> vector<8x24xf32>
    %c0_30 = arith.constant 0 : index
    %c0_31 = arith.constant 0 : index
    %118 = vector.load %arg10[%c0_30, %c0_31] : memref<1x24xf32, #tpu.memory_space<vmem>>, vector<1x24xf32>
    %119 = vector.broadcast %118 : vector<1x24xf32> to vector<8x24xf32>
    %120 = arith.addf %117, %119 : vector<8x24xf32>
    %cst_32 = arith.constant 0.000000e+00 : f32
    %121 = vector.broadcast %cst_32 : f32 to vector<8x24xf32>
    %122 = arith.maximumf %120, %121 : vector<8x24xf32>
    %c0_33 = arith.constant 0 : index
    %c0_34 = arith.constant 0 : index
    %123 = vector.load %arg11[%c0_33, %c0_34] : memref<24x9xf32, #tpu.memory_space<vmem>>, vector<24x9xf32>
    %cst_35 = arith.constant dense<0.000000e+00> : vector<8x9xf32>
    %124 = tpu.matmul %122, %123, %cst_35 {dimension_numbers = #tpu.dot_dimension_numbers<[1], [0], [0], [1], [0, 0, 1, 1], [], []>} : vector<8x24xf32>, vector<24x9xf32>, vector<8x9xf32> -> vector<8x9xf32>
    %125 = vector.extract_strided_slice %124 {offsets = [0, 0], sizes = [8, 3], strides = [1, 1]} : vector<8x9xf32> to vector<8x3xf32>
    %cst_36 = arith.constant dense<0xFF800000> : vector<8xf32>
    %126 = vector.multi_reduction <maximumf>, %125, %cst_36 [1] : vector<8x3xf32> to vector<8xf32>
    %127 = vector.shape_cast %126 : vector<8xf32> to vector<8x1xf32>
    %128 = vector.broadcast %127 : vector<8x1xf32> to vector<8x3xf32>
    %129 = arith.subf %125, %128 : vector<8x3xf32>
    %130 = math.exp %129 : vector<8x3xf32>
    %cst_37 = arith.constant dense<0.000000e+00> : vector<8xf32>
    %131 = vector.multi_reduction <add>, %130, %cst_37 [1] : vector<8x3xf32> to vector<8xf32>
    %132 = vector.shape_cast %131 : vector<8xf32> to vector<8x1xf32>
    %133 = tpu.reciprocal %132 {approx = true} : vector<8x1xf32> -> vector<8x1xf32>
    %134 = vector.broadcast %133 : vector<8x1xf32> to vector<8x3xf32>
    %135 = arith.mulf %130, %134 : vector<8x3xf32>
    %136 = vector.extract_strided_slice %135 {offsets = [0, 0], sizes = [8, 1], strides = [1, 1]} : vector<8x3xf32> to vector<8x1xf32>
    %137 = vector.extract_strided_slice %111 {offsets = [0, 0], sizes = [8, 16], strides = [1, 1]} : vector<8x48xf32> to vector<8x16xf32>
    %138 = vector.broadcast %136 : vector<8x1xf32> to vector<8x16xf32>
    %139 = arith.mulf %138, %137 : vector<8x16xf32>
    %140 = vector.extract_strided_slice %135 {offsets = [0, 1], sizes = [8, 1], strides = [1, 1]} : vector<8x3xf32> to vector<8x1xf32>
    %141 = vector.extract_strided_slice %111 {offsets = [0, 16], sizes = [8, 16], strides = [1, 1]} : vector<8x48xf32> to vector<8x16xf32>
    %142 = vector.broadcast %140 : vector<8x1xf32> to vector<8x16xf32>
    %143 = arith.mulf %142, %141 : vector<8x16xf32>
    %144 = arith.addf %139, %143 : vector<8x16xf32>
    %145 = vector.extract_strided_slice %135 {offsets = [0, 2], sizes = [8, 1], strides = [1, 1]} : vector<8x3xf32> to vector<8x1xf32>
    %146 = vector.extract_strided_slice %111 {offsets = [0, 32], sizes = [8, 16], strides = [1, 1]} : vector<8x48xf32> to vector<8x16xf32>
    %147 = vector.broadcast %145 : vector<8x1xf32> to vector<8x16xf32>
    %148 = arith.mulf %147, %146 : vector<8x16xf32>
    %149 = arith.addf %144, %148 : vector<8x16xf32>
    %150 = vector.extract_strided_slice %124 {offsets = [0, 3], sizes = [8, 3], strides = [1, 1]} : vector<8x9xf32> to vector<8x3xf32>
    %cst_38 = arith.constant dense<0xFF800000> : vector<8xf32>
    %151 = vector.multi_reduction <maximumf>, %150, %cst_38 [1] : vector<8x3xf32> to vector<8xf32>
    %152 = vector.shape_cast %151 : vector<8xf32> to vector<8x1xf32>
    %153 = vector.broadcast %152 : vector<8x1xf32> to vector<8x3xf32>
    %154 = arith.subf %150, %153 : vector<8x3xf32>
    %155 = math.exp %154 : vector<8x3xf32>
    %cst_39 = arith.constant dense<0.000000e+00> : vector<8xf32>
    %156 = vector.multi_reduction <add>, %155, %cst_39 [1] : vector<8x3xf32> to vector<8xf32>
    %157 = vector.shape_cast %156 : vector<8xf32> to vector<8x1xf32>
    %158 = tpu.reciprocal %157 {approx = true} : vector<8x1xf32> -> vector<8x1xf32>
    %159 = vector.broadcast %158 : vector<8x1xf32> to vector<8x3xf32>
    %160 = arith.mulf %155, %159 : vector<8x3xf32>
    %161 = vector.extract_strided_slice %160 {offsets = [0, 0], sizes = [8, 1], strides = [1, 1]} : vector<8x3xf32> to vector<8x1xf32>
    %162 = vector.extract_strided_slice %111 {offsets = [0, 0], sizes = [8, 16], strides = [1, 1]} : vector<8x48xf32> to vector<8x16xf32>
    %163 = vector.broadcast %161 : vector<8x1xf32> to vector<8x16xf32>
    %164 = arith.mulf %163, %162 : vector<8x16xf32>
    %165 = vector.extract_strided_slice %160 {offsets = [0, 1], sizes = [8, 1], strides = [1, 1]} : vector<8x3xf32> to vector<8x1xf32>
    %166 = vector.extract_strided_slice %111 {offsets = [0, 16], sizes = [8, 16], strides = [1, 1]} : vector<8x48xf32> to vector<8x16xf32>
    %167 = vector.broadcast %165 : vector<8x1xf32> to vector<8x16xf32>
    %168 = arith.mulf %167, %166 : vector<8x16xf32>
    %169 = arith.addf %164, %168 : vector<8x16xf32>
    %170 = vector.extract_strided_slice %160 {offsets = [0, 2], sizes = [8, 1], strides = [1, 1]} : vector<8x3xf32> to vector<8x1xf32>
    %171 = vector.extract_strided_slice %111 {offsets = [0, 32], sizes = [8, 16], strides = [1, 1]} : vector<8x48xf32> to vector<8x16xf32>
    %172 = vector.broadcast %170 : vector<8x1xf32> to vector<8x16xf32>
    %173 = arith.mulf %172, %171 : vector<8x16xf32>
    %174 = arith.addf %169, %173 : vector<8x16xf32>
    %175 = vector.extract_strided_slice %124 {offsets = [0, 6], sizes = [8, 3], strides = [1, 1]} : vector<8x9xf32> to vector<8x3xf32>
    %cst_40 = arith.constant dense<0xFF800000> : vector<8xf32>
    %176 = vector.multi_reduction <maximumf>, %175, %cst_40 [1] : vector<8x3xf32> to vector<8xf32>
    %177 = vector.shape_cast %176 : vector<8xf32> to vector<8x1xf32>
    %178 = vector.broadcast %177 : vector<8x1xf32> to vector<8x3xf32>
    %179 = arith.subf %175, %178 : vector<8x3xf32>
    %180 = math.exp %179 : vector<8x3xf32>
    %cst_41 = arith.constant dense<0.000000e+00> : vector<8xf32>
    %181 = vector.multi_reduction <add>, %180, %cst_41 [1] : vector<8x3xf32> to vector<8xf32>
    %182 = vector.shape_cast %181 : vector<8xf32> to vector<8x1xf32>
    %183 = tpu.reciprocal %182 {approx = true} : vector<8x1xf32> -> vector<8x1xf32>
    %184 = vector.broadcast %183 : vector<8x1xf32> to vector<8x3xf32>
    %185 = arith.mulf %180, %184 : vector<8x3xf32>
    %186 = vector.extract_strided_slice %185 {offsets = [0, 0], sizes = [8, 1], strides = [1, 1]} : vector<8x3xf32> to vector<8x1xf32>
    %187 = vector.extract_strided_slice %111 {offsets = [0, 0], sizes = [8, 16], strides = [1, 1]} : vector<8x48xf32> to vector<8x16xf32>
    %188 = vector.broadcast %186 : vector<8x1xf32> to vector<8x16xf32>
    %189 = arith.mulf %188, %187 : vector<8x16xf32>
    %190 = vector.extract_strided_slice %185 {offsets = [0, 1], sizes = [8, 1], strides = [1, 1]} : vector<8x3xf32> to vector<8x1xf32>
    %191 = vector.extract_strided_slice %111 {offsets = [0, 16], sizes = [8, 16], strides = [1, 1]} : vector<8x48xf32> to vector<8x16xf32>
    %192 = vector.broadcast %190 : vector<8x1xf32> to vector<8x16xf32>
    %193 = arith.mulf %192, %191 : vector<8x16xf32>
    %194 = arith.addf %189, %193 : vector<8x16xf32>
    %195 = vector.extract_strided_slice %185 {offsets = [0, 2], sizes = [8, 1], strides = [1, 1]} : vector<8x3xf32> to vector<8x1xf32>
    %196 = vector.extract_strided_slice %111 {offsets = [0, 32], sizes = [8, 16], strides = [1, 1]} : vector<8x48xf32> to vector<8x16xf32>
    %197 = vector.broadcast %195 : vector<8x1xf32> to vector<8x16xf32>
    %198 = arith.mulf %197, %196 : vector<8x16xf32>
    %199 = arith.addf %194, %198 : vector<8x16xf32>
    %200 = tpu.concatenate %149, %174, %199 in 1 : vector<8x16xf32>, vector<8x16xf32>, vector<8x16xf32> -> vector<8x48xf32>
    %c0_42 = arith.constant 0 : index
    %c0_43 = arith.constant 0 : index
    %201 = vector.load %arg12[%c0_42, %c0_43] : memref<48x96xf32, #tpu.memory_space<vmem>>, vector<48x96xf32>
    %cst_44 = arith.constant dense<0.000000e+00> : vector<8x96xf32>
    %202 = tpu.matmul %200, %201, %cst_44 {dimension_numbers = #tpu.dot_dimension_numbers<[1], [0], [0], [1], [0, 0, 1, 1], [], []>} : vector<8x48xf32>, vector<48x96xf32>, vector<8x96xf32> -> vector<8x96xf32>
    %c0_45 = arith.constant 0 : index
    %c0_46 = arith.constant 0 : index
    %203 = vector.load %arg13[%c0_45, %c0_46] : memref<1x96xf32, #tpu.memory_space<vmem>>, vector<1x96xf32>
    %204 = vector.broadcast %203 : vector<1x96xf32> to vector<8x96xf32>
    %205 = arith.addf %202, %204 : vector<8x96xf32>
    %cst_47 = arith.constant 0.000000e+00 : f32
    %206 = vector.broadcast %cst_47 : f32 to vector<8x96xf32>
    %207 = arith.maximumf %205, %206 : vector<8x96xf32>
    %c0_48 = arith.constant 0 : index
    %c0_49 = arith.constant 0 : index
    %208 = vector.load %arg14[%c0_48, %c0_49] : memref<96x48xf32, #tpu.memory_space<vmem>>, vector<96x48xf32>
    %cst_50 = arith.constant dense<0.000000e+00> : vector<8x48xf32>
    %209 = tpu.matmul %207, %208, %cst_50 {dimension_numbers = #tpu.dot_dimension_numbers<[1], [0], [0], [1], [0, 0, 1, 1], [], []>} : vector<8x96xf32>, vector<96x48xf32>, vector<8x48xf32> -> vector<8x48xf32>
    %c0_51 = arith.constant 0 : index
    %c0_52 = arith.constant 0 : index
    %210 = vector.load %arg15[%c0_51, %c0_52] : memref<1x48xf32, #tpu.memory_space<vmem>>, vector<1x48xf32>
    %211 = vector.broadcast %210 : vector<1x48xf32> to vector<8x48xf32>
    %212 = arith.addf %209, %211 : vector<8x48xf32>
    %cst_53 = arith.constant 0.000000e+00 : f32
    %213 = vector.broadcast %cst_53 : f32 to vector<8x48xf32>
    %214 = arith.maximumf %212, %213 : vector<8x48xf32>
    %215 = arith.addf %149, %199 : vector<8x16xf32>
    %216 = arith.addf %174, %199 : vector<8x16xf32>
    %217 = arith.addf %199, %199 : vector<8x16xf32>
    %218 = tpu.concatenate %215, %216, %217 in 1 : vector<8x16xf32>, vector<8x16xf32>, vector<8x16xf32> -> vector<8x48xf32>
    %c0_54 = arith.constant 0 : index
    %c0_55 = arith.constant 0 : index
    %219 = vector.load %arg16[%c0_54, %c0_55] : memref<48x24xf32, #tpu.memory_space<vmem>>, vector<48x24xf32>
    %cst_56 = arith.constant dense<0.000000e+00> : vector<8x24xf32>
    %220 = tpu.matmul %218, %219, %cst_56 {dimension_numbers = #tpu.dot_dimension_numbers<[1], [0], [0], [1], [0, 0, 1, 1], [], []>} : vector<8x48xf32>, vector<48x24xf32>, vector<8x24xf32> -> vector<8x24xf32>
    %c0_57 = arith.constant 0 : index
    %c0_58 = arith.constant 0 : index
    %221 = vector.load %arg17[%c0_57, %c0_58] : memref<1x24xf32, #tpu.memory_space<vmem>>, vector<1x24xf32>
    %222 = vector.broadcast %221 : vector<1x24xf32> to vector<8x24xf32>
    %223 = arith.addf %220, %222 : vector<8x24xf32>
    %cst_59 = arith.constant 0.000000e+00 : f32
    %224 = vector.broadcast %cst_59 : f32 to vector<8x24xf32>
    %225 = arith.maximumf %223, %224 : vector<8x24xf32>
    %c0_60 = arith.constant 0 : index
    %c0_61 = arith.constant 0 : index
    %226 = vector.load %arg18[%c0_60, %c0_61] : memref<24x9xf32, #tpu.memory_space<vmem>>, vector<24x9xf32>
    %cst_62 = arith.constant dense<0.000000e+00> : vector<8x9xf32>
    %227 = tpu.matmul %225, %226, %cst_62 {dimension_numbers = #tpu.dot_dimension_numbers<[1], [0], [0], [1], [0, 0, 1, 1], [], []>} : vector<8x24xf32>, vector<24x9xf32>, vector<8x9xf32> -> vector<8x9xf32>
    %228 = vector.extract_strided_slice %227 {offsets = [0, 0], sizes = [8, 3], strides = [1, 1]} : vector<8x9xf32> to vector<8x3xf32>
    %cst_63 = arith.constant dense<0xFF800000> : vector<8xf32>
    %229 = vector.multi_reduction <maximumf>, %228, %cst_63 [1] : vector<8x3xf32> to vector<8xf32>
    %230 = vector.shape_cast %229 : vector<8xf32> to vector<8x1xf32>
    %231 = vector.broadcast %230 : vector<8x1xf32> to vector<8x3xf32>
    %232 = arith.subf %228, %231 : vector<8x3xf32>
    %233 = math.exp %232 : vector<8x3xf32>
    %cst_64 = arith.constant dense<0.000000e+00> : vector<8xf32>
    %234 = vector.multi_reduction <add>, %233, %cst_64 [1] : vector<8x3xf32> to vector<8xf32>
    %235 = vector.shape_cast %234 : vector<8xf32> to vector<8x1xf32>
    %236 = tpu.reciprocal %235 {approx = true} : vector<8x1xf32> -> vector<8x1xf32>
    %237 = vector.broadcast %236 : vector<8x1xf32> to vector<8x3xf32>
    %238 = arith.mulf %233, %237 : vector<8x3xf32>
    %239 = vector.extract_strided_slice %238 {offsets = [0, 0], sizes = [8, 1], strides = [1, 1]} : vector<8x3xf32> to vector<8x1xf32>
    %240 = vector.extract_strided_slice %214 {offsets = [0, 0], sizes = [8, 16], strides = [1, 1]} : vector<8x48xf32> to vector<8x16xf32>
    %241 = vector.broadcast %239 : vector<8x1xf32> to vector<8x16xf32>
    %242 = arith.mulf %241, %240 : vector<8x16xf32>
    %243 = vector.extract_strided_slice %238 {offsets = [0, 1], sizes = [8, 1], strides = [1, 1]} : vector<8x3xf32> to vector<8x1xf32>
    %244 = vector.extract_strided_slice %214 {offsets = [0, 16], sizes = [8, 16], strides = [1, 1]} : vector<8x48xf32> to vector<8x16xf32>
    %245 = vector.broadcast %243 : vector<8x1xf32> to vector<8x16xf32>
    %246 = arith.mulf %245, %244 : vector<8x16xf32>
    %247 = arith.addf %242, %246 : vector<8x16xf32>
    %248 = vector.extract_strided_slice %238 {offsets = [0, 2], sizes = [8, 1], strides = [1, 1]} : vector<8x3xf32> to vector<8x1xf32>
    %249 = vector.extract_strided_slice %214 {offsets = [0, 32], sizes = [8, 16], strides = [1, 1]} : vector<8x48xf32> to vector<8x16xf32>
    %250 = vector.broadcast %248 : vector<8x1xf32> to vector<8x16xf32>
    %251 = arith.mulf %250, %249 : vector<8x16xf32>
    %252 = arith.addf %247, %251 : vector<8x16xf32>
    %253 = vector.extract_strided_slice %227 {offsets = [0, 3], sizes = [8, 3], strides = [1, 1]} : vector<8x9xf32> to vector<8x3xf32>
    %cst_65 = arith.constant dense<0xFF800000> : vector<8xf32>
    %254 = vector.multi_reduction <maximumf>, %253, %cst_65 [1] : vector<8x3xf32> to vector<8xf32>
    %255 = vector.shape_cast %254 : vector<8xf32> to vector<8x1xf32>
    %256 = vector.broadcast %255 : vector<8x1xf32> to vector<8x3xf32>
    %257 = arith.subf %253, %256 : vector<8x3xf32>
    %258 = math.exp %257 : vector<8x3xf32>
    %cst_66 = arith.constant dense<0.000000e+00> : vector<8xf32>
    %259 = vector.multi_reduction <add>, %258, %cst_66 [1] : vector<8x3xf32> to vector<8xf32>
    %260 = vector.shape_cast %259 : vector<8xf32> to vector<8x1xf32>
    %261 = tpu.reciprocal %260 {approx = true} : vector<8x1xf32> -> vector<8x1xf32>
    %262 = vector.broadcast %261 : vector<8x1xf32> to vector<8x3xf32>
    %263 = arith.mulf %258, %262 : vector<8x3xf32>
    %264 = vector.extract_strided_slice %263 {offsets = [0, 0], sizes = [8, 1], strides = [1, 1]} : vector<8x3xf32> to vector<8x1xf32>
    %265 = vector.extract_strided_slice %214 {offsets = [0, 0], sizes = [8, 16], strides = [1, 1]} : vector<8x48xf32> to vector<8x16xf32>
    %266 = vector.broadcast %264 : vector<8x1xf32> to vector<8x16xf32>
    %267 = arith.mulf %266, %265 : vector<8x16xf32>
    %268 = vector.extract_strided_slice %263 {offsets = [0, 1], sizes = [8, 1], strides = [1, 1]} : vector<8x3xf32> to vector<8x1xf32>
    %269 = vector.extract_strided_slice %214 {offsets = [0, 16], sizes = [8, 16], strides = [1, 1]} : vector<8x48xf32> to vector<8x16xf32>
    %270 = vector.broadcast %268 : vector<8x1xf32> to vector<8x16xf32>
    %271 = arith.mulf %270, %269 : vector<8x16xf32>
    %272 = arith.addf %267, %271 : vector<8x16xf32>
    %273 = vector.extract_strided_slice %263 {offsets = [0, 2], sizes = [8, 1], strides = [1, 1]} : vector<8x3xf32> to vector<8x1xf32>
    %274 = vector.extract_strided_slice %214 {offsets = [0, 32], sizes = [8, 16], strides = [1, 1]} : vector<8x48xf32> to vector<8x16xf32>
    %275 = vector.broadcast %273 : vector<8x1xf32> to vector<8x16xf32>
    %276 = arith.mulf %275, %274 : vector<8x16xf32>
    %277 = arith.addf %272, %276 : vector<8x16xf32>
    %278 = tpu.concatenate %252, %277 in 1 : vector<8x16xf32>, vector<8x16xf32> -> vector<8x32xf32>
    %c0_67 = arith.constant 0 : index
    %c0_68 = arith.constant 0 : index
    %279 = vector.load %arg19[%c0_67, %c0_68] : memref<32x16xf32, #tpu.memory_space<vmem>>, vector<32x16xf32>
    %cst_69 = arith.constant dense<0.000000e+00> : vector<8x16xf32>
    %280 = tpu.matmul %278, %279, %cst_69 {dimension_numbers = #tpu.dot_dimension_numbers<[1], [0], [0], [1], [0, 0, 1, 1], [], []>} : vector<8x32xf32>, vector<32x16xf32>, vector<8x16xf32> -> vector<8x16xf32>
    %c0_70 = arith.constant 0 : index
    %c0_71 = arith.constant 0 : index
    %281 = vector.load %arg20[%c0_70, %c0_71] : memref<1x16xf32, #tpu.memory_space<vmem>>, vector<1x16xf32>
    %282 = vector.broadcast %281 : vector<1x16xf32> to vector<8x16xf32>
    %283 = arith.addf %280, %282 : vector<8x16xf32>
    %cst_72 = arith.constant 0.000000e+00 : f32
    %284 = vector.broadcast %cst_72 : f32 to vector<8x16xf32>
    %285 = arith.maximumf %283, %284 : vector<8x16xf32>
    %c0_73 = arith.constant 0 : index
    %c0_74 = arith.constant 0 : index
    %286 = vector.load %arg21[%c0_73, %c0_74] : memref<16x2xf32, #tpu.memory_space<vmem>>, vector<16x2xf32>
    %cst_75 = arith.constant dense<0.000000e+00> : vector<8x2xf32>
    %287 = tpu.matmul %285, %286, %cst_75 {dimension_numbers = #tpu.dot_dimension_numbers<[1], [0], [0], [1], [0, 0, 1, 1], [], []>} : vector<8x16xf32>, vector<16x2xf32>, vector<8x2xf32> -> vector<8x2xf32>
    %288 = arith.negf %287 : vector<8x2xf32>
    %289 = math.exp %288 : vector<8x2xf32>
    %cst_76 = arith.constant 1.000000e+00 : f32
    %290 = vector.broadcast %cst_76 : f32 to vector<8x2xf32>
    %291 = arith.addf %290, %289 : vector<8x2xf32>
    %292 = arith.divf %290, %291 : vector<8x2xf32>
    %c0_77 = arith.constant 0 : index
    %c0_78 = arith.constant 0 : index
    %293 = vector.load %arg22[%c0_77, %c0_78] : memref<8x2xf32, #tpu.memory_space<vmem>>, vector<8x2xf32>
    tpu.vector_store %arg22[%c0_77, %c0_78], %292 {strides = array<i32>} : memref<8x2xf32, #tpu.memory_space<vmem>>, vector<8x2xf32>,
    return
  }
  func.func @transform_0(%arg0: i32) -> (i32, i32) {
    %c0_i32 = arith.constant 0 : i32
    %c0_i32_0 = arith.constant 0 : i32
    return %arg0, %c0_i32 : i32, i32
  }
  func.func @transform_1(%arg0: i32) -> (i32, i32) {
    %c0_i32 = arith.constant 0 : i32
    %c0_i32_0 = arith.constant 0 : i32
    %c0_i32_1 = arith.constant 0 : i32
    return %c0_i32, %c0_i32_0 : i32, i32
  }
  func.func @transform_2(%arg0: i32) -> (i32, i32) {
    %c0_i32 = arith.constant 0 : i32
    %c0_i32_0 = arith.constant 0 : i32
    %c0_i32_1 = arith.constant 0 : i32
    return %c0_i32, %c0_i32_0 : i32, i32
  }
  func.func @transform_3(%arg0: i32) -> (i32, i32) {
    %c0_i32 = arith.constant 0 : i32
    %c0_i32_0 = arith.constant 0 : i32
    %c0_i32_1 = arith.constant 0 : i32
    return %c0_i32, %c0_i32_0 : i32, i32
  }
  func.func @transform_4(%arg0: i32) -> (i32, i32) {
    %c0_i32 = arith.constant 0 : i32
    %c0_i32_0 = arith.constant 0 : i32
    %c0_i32_1 = arith.constant 0 : i32
    return %c0_i32, %c0_i32_0 : i32, i32
  }
  func.func @transform_5(%arg0: i32) -> (i32, i32) {
    %c0_i32 = arith.constant 0 : i32
    %c0_i32_0 = arith.constant 0 : i32
    %c0_i32_1 = arith.constant 0 : i32
    return %c0_i32, %c0_i32_0 : i32, i32
  }
  func.func @transform_6(%arg0: i32) -> (i32, i32) {
    %c0_i32 = arith.constant 0 : i32
    %c0_i32_0 = arith.constant 0 : i32
    %c0_i32_1 = arith.constant 0 : i32
    return %c0_i32, %c0_i32_0 : i32, i32
  }
  func.func @transform_7(%arg0: i32) -> (i32, i32) {
    %c0_i32 = arith.constant 0 : i32
    %c0_i32_0 = arith.constant 0 : i32
    %c0_i32_1 = arith.constant 0 : i32
    return %c0_i32, %c0_i32_0 : i32, i32
  }
  func.func @transform_8(%arg0: i32) -> (i32, i32) {
    %c0_i32 = arith.constant 0 : i32
    %c0_i32_0 = arith.constant 0 : i32
    %c0_i32_1 = arith.constant 0 : i32
    return %c0_i32, %c0_i32_0 : i32, i32
  }
  func.func @transform_9(%arg0: i32) -> (i32, i32) {
    %c0_i32 = arith.constant 0 : i32
    %c0_i32_0 = arith.constant 0 : i32
    %c0_i32_1 = arith.constant 0 : i32
    return %c0_i32, %c0_i32_0 : i32, i32
  }
  func.func @transform_10(%arg0: i32) -> (i32, i32) {
    %c0_i32 = arith.constant 0 : i32
    %c0_i32_0 = arith.constant 0 : i32
    %c0_i32_1 = arith.constant 0 : i32
    return %c0_i32, %c0_i32_0 : i32, i32
  }
  func.func @transform_11(%arg0: i32) -> (i32, i32) {
    %c0_i32 = arith.constant 0 : i32
    %c0_i32_0 = arith.constant 0 : i32
    %c0_i32_1 = arith.constant 0 : i32
    return %c0_i32, %c0_i32_0 : i32, i32
  }
  func.func @transform_12(%arg0: i32) -> (i32, i32) {
    %c0_i32 = arith.constant 0 : i32
    %c0_i32_0 = arith.constant 0 : i32
    %c0_i32_1 = arith.constant 0 : i32
    return %c0_i32, %c0_i32_0 : i32, i32
  }
  func.func @transform_13(%arg0: i32) -> (i32, i32) {
    %c0_i32 = arith.constant 0 : i32
    %c0_i32_0 = arith.constant 0 : i32
    %c0_i32_1 = arith.constant 0 : i32
    return %c0_i32, %c0_i32_0 : i32, i32
  }
  func.func @transform_14(%arg0: i32) -> (i32, i32) {
    %c0_i32 = arith.constant 0 : i32
    %c0_i32_0 = arith.constant 0 : i32
    %c0_i32_1 = arith.constant 0 : i32
    return %c0_i32, %c0_i32_0 : i32, i32
  }
  func.func @transform_15(%arg0: i32) -> (i32, i32) {
    %c0_i32 = arith.constant 0 : i32
    %c0_i32_0 = arith.constant 0 : i32
    %c0_i32_1 = arith.constant 0 : i32
    return %c0_i32, %c0_i32_0 : i32, i32
  }
  func.func @transform_16(%arg0: i32) -> (i32, i32) {
    %c0_i32 = arith.constant 0 : i32
    %c0_i32_0 = arith.constant 0 : i32
    %c0_i32_1 = arith.constant 0 : i32
    return %c0_i32, %c0_i32_0 : i32, i32
  }
  func.func @transform_17(%arg0: i32) -> (i32, i32) {
    %c0_i32 = arith.constant 0 : i32
    %c0_i32_0 = arith.constant 0 : i32
    %c0_i32_1 = arith.constant 0 : i32
    return %c0_i32, %c0_i32_0 : i32, i32
  }
  func.func @transform_18(%arg0: i32) -> (i32, i32) {
    %c0_i32 = arith.constant 0 : i32
    %c0_i32_0 = arith.constant 0 : i32
    %c0_i32_1 = arith.constant 0 : i32
    return %c0_i32, %c0_i32_0 : i32, i32
  }
  func.func @transform_19(%arg0: i32) -> (i32, i32) {
    %c0_i32 = arith.constant 0 : i32
    %c0_i32_0 = arith.constant 0 : i32
    %c0_i32_1 = arith.constant 0 : i32
    return %c0_i32, %c0_i32_0 : i32, i32
  }
  func.func @transform_20(%arg0: i32) -> (i32, i32) {
    %c0_i32 = arith.constant 0 : i32
    %c0_i32_0 = arith.constant 0 : i32
    %c0_i32_1 = arith.constant 0 : i32
    return %c0_i32, %c0_i32_0 : i32, i32
  }
  func.func @transform_21(%arg0: i32) -> (i32, i32) {
    %c0_i32 = arith.constant 0 : i32
    %c0_i32_0 = arith.constant 0 : i32
    return %arg0, %c0_i32 : i32, i32
  }
}

</mosaic_0001>

<bundles_post_ra>
// kernel: tpu_custom_call.1
= control target key start
LH: loop header
LB: loop body
LE: loop exit
PB: predicated region body
PF: predicated region fallthrough
CT: control target
= control target key end

     0   :  { %v1037_v0 = vmov 3   ;;  %v1038_v4 = vmov 5   ;;  %v1039_v7 = vmov 0.0   ;;  %v1040_v9 = vmov 4   ;;  %s1043_s27 = smov 127   ;;  %s1046_s28 = smov 126   ;;  %s1529_s0 = inlined_call_operand.vmem [shape: f32[8,7], index: 0, kind: input, shape index: {}]   ;;  %s1530_s1 = inlined_call_operand.vmem [shape: f32[10,24], index: 1, kind: input, shape index: {}]   ;;  %s1531_s3 = inlined_call_operand.vmem [shape: f32[12,24], index: 3, kind: input, shape index: {}]   ;;  %s1532_s2 = inlined_call_operand.vmem [shape: f32[10,24], index: 2, kind: input, shape index: {}]   ;;  %s1533_s9 = inlined_call_operand.vmem [shape: f32[1,24], index: 9, kind: input, shape index: {}]   ;;  %s1534_s8 = inlined_call_operand.vmem [shape: f32[75,24], index: 8, kind: input, shape index: {}]   ;;  %s1535_s4 = inlined_call_operand.vmem [shape: f32[75,96], index: 4, kind: input, shape index: {}]   ;;  %s1536_s6 = inlined_call_operand.vmem [shape: f32[96,48], index: 6, kind: input, shape index: {}]   ;;  %s1537_s10 = inlined_call_operand.vmem [shape: f32[24,9], index: 10, kind: input, shape index: {}]   ;;  %s1538_s5 = inlined_call_operand.vmem [shape: f32[1,96], index: 5, kind: input, shape index: {}]   ;;  %s1539_s7 = inlined_call_operand.vmem [shape: f32[1,48], index: 7, kind: input, shape index: {}]   ;;  %s1540_s16 = inlined_call_operand.vmem [shape: f32[1,24], index: 16, kind: input, shape index: {}]   ;;  %s1541_s15 = inlined_call_operand.vmem [shape: f32[48,24], index: 15, kind: input, shape index: {}]   ;;  %s1542_s11 = inlined_call_operand.vmem [shape: f32[48,96], index: 11, kind: input, shape index: {}]   ;;  %s1543_s13 = inlined_call_operand.vmem [shape: f32[96,48], index: 13, kind: input, shape index: {}]   ;;  %s1544_s17 = inlined_call_operand.vmem [shape: f32[24,9], index: 17, kind: input, shape index: {}]   ;;  %s1545_s12 = inlined_call_operand.vmem [shape: f32[1,96], index: 12, kind: input, shape index: {}]   ;;  %s1546_s14 = inlined_call_operand.vmem [shape: f32[1,48], index: 14, kind: input, shape index: {}]   ;;  %s1547_s18 = inlined_call_operand.vmem [shape: f32[32,16], index: 18, kind: input, shape index: {}]   ;;  %s1548_s19 = inlined_call_operand.vmem [shape: f32[1,16], index: 19, kind: input, shape index: {}]   ;;  %s1549_s20 = inlined_call_operand.vmem [shape: f32[16,2], index: 20, kind: input, shape index: {}]   ;;  %s1550_s21 = inlined_call_operand.vmem [shape: f32[8,2], index: 21, kind: output, shape index: {}]  }
   0x1   :  { %1555 = sst [smem:[#allocation2_spill]] %s1529_s0  ;;  %978 = vset.pattern.permute.xlu0 %v1037_v0  ;;  %981 = vset.pattern.permute.xlu1 %v1037_v0  ;;  %v1041_v10 = vmov 6   ;;  %v1042_v11 = vmov 0   ;;  %v1044_v12 = vmov 1   ;;  %vm84_vm2 = vcmask 1041408   ;;  %s1047_s0 = smov 112  }
   0x2   :  { %1556 = sst [smem:[#allocation3_spill]] %s1530_s1  ;;  %980 = vset.pattern.permute.xlu2 %v1038_v4  ;;  %vm213_vm3 = vcmask 1043456   ;;  %v70_v22 = vlaneseq  ;;  %vm80_vm7 = vcmask 80896   ;;  %vm209_vm10 = vcmask 97280   ;;  %s1049_s30 = smov 14  }
   0x3   :  { %1557 = sst [smem:[#allocation4_spill]] %s1531_s3  ;;  %s1051_s22 = smov 1  }
   0x4   :  { %1558 = sst [smem:[#allocation5_spill]] %s1532_s2  ;;  %s1045_s2 = smov 125   ;;  %v71_v23 = vand.u32 127, %v70_v22 }
   0x5   :  { %1559 = sst [smem:[#allocation6_spill]] %s1533_s9  ;;  %s1052_s23 = smov 9  }
   0x6   :  { %1560 = sst [smem:[#allocation7_spill]] %s1534_s8  ;;  %s1050_s8 = smov 8  }
   0x7   :  { %s1561_s26 = sld [smem:[#allocation2_spill]]  ;;  %s1054_s24 = smov 25  }
   0x8   :  { %s1562_s9 = sld [smem:[#allocation3_spill]]  ;;  %s1055_s3 = smov 50  }
   0x9   :  { %s1563_s1 = sld [smem:[#allocation4_spill]] }
   0xd   :  { %v1177_v1 = vld [vmem:[%s1561_s26] sm:$0xff] }
   0xe   :  { %vm947_vm0 = vcmp.lt.s32.totalorder %v1177_v1, 0  ;;  %v948_v2 = vceil.f32 %v1177_v1  ;;  %v949_v3 = vfloor.f32 %v1177_v1  ;;  %v79_v13 = vld [vmem:[%s1562_s9 + $0x8] sm:$0x3]  ;;  %v78_v14 = vld [vmem:[%s1562_s9] sm:$0xff]  ;;  %s1048_s9 = smov 120  }
   0xf   :  { %922 = vmatpush.msk.msra.mxu0 %vm84_vm2, %v79_v13  ;;  %v208_v15 = vld [vmem:[%s1563_s1 + $0x8] sm:$0xf]  ;;  %v207_v16 = vld [vmem:[%s1563_s1] sm:$0xff]  ;;  %s1053_s1 = smov 17  }
  0x10   :  { %v950_v5 = vsel %vm947_vm0, %v948_v2, %v949_v3  ;;  %932 = vmatpush.msk.msra.mxu2 %vm213_vm3, %v208_v15  ;;  %vm270_vm0 = vcmask 64512   ;;  %vm328_vm3 = vcmask 1042432  }
  0x11   :  { %v951_v6 = vcvt.f32.s32 %v950_v5  ;;  %103 = vmatpush.msra.mxu0 %v78_v14 }
  0x12   :  { %232 = vmatpush.msra.mxu2 %v207_v16 }
  0x13   :  { %146 = vperm.xlu0 %978, %v951_v6   ;;  %vm142_vm1 = vcmp.gt.s32.totalorder %v951_v6, 0  ;;  %176 = vperm.xlu2 %980, %v951_v6  }
  0x14   :  { %v1185_v8 = vsel %vm142_vm1, 1.0, %v1039_v7  ;;  %vm272_vm1 = vcmask 130048  }
  0x15   :  { %153 = vperm.xlu1 %981, %v1185_v8  }
  0x1b   :  { %979 = vset.pattern.permute.xlu0 %v1040_v9  ;;  %182 = vperm.xlu2 %980, %v1185_v8  }
  0x1c   :  { %160 = vperm.xlu0 %979, %v951_v6  }
  0x1d   :  { %982 = vset.pattern.permute.xlu1 %v1040_v9 }
  0x1e   :  { %166 = vperm.xlu1 %982, %v1185_v8  }
  0x23   :  { %984 = vset.pattern.permute.xlu2 %v1041_v10 }
  0x24   :  { %985 = vset.pattern.permute.xlu0 %v1042_v11  ;;  %198 = vperm.xlu2 %984, %v1185_v8  }
  0x25   :  { %73 = vperm.xlu0 %985, %v951_v6  }
  0x26   :  { %983 = vset.pattern.permute.xlu1 %v1041_v10 }
  0x27   :  { %192 = vperm.xlu1 %983, %v951_v6  }
  0x2c   :  { %171 = vrot.lane.b32.xlu2 %v1185_v8, %s1043_s27  ;;  %s1564_s27 = sld [smem:[#allocation5_spill]] }
  0x2d   :  { %987 = vset.pattern.permute.xlu0 %v1037_v0  ;;  %988 = vset.pattern.permute.xlu2 %v1040_v9 }
  0x2f   :  { %986 = vset.pattern.permute.xlu1 %v1044_v12 }
  0x30   :  { %109 = vperm.xlu1 %986, %v951_v6  }
  0x32   :  { %v115_v17 = vld [vmem:[%s1564_s27 + $0x8] sm:$0x3]  ;;  %v114_v18 = vld [vmem:[%s1564_s27] sm:$0xff]  ;;  %s1565_s27 = sld [smem:[#allocation7_spill]] }
  0x33   :  { %925 = vmatpush.msk.msra.mxu1 %vm84_vm2, %v115_v17  ;;  %vm274_vm2 = vcmask 138240  }
  0x34   :  { %203 = vrot.lane.b32.xlu2 %v1185_v8, %s1045_s2 }
  0x35   :  { %137 = vmatpush.msra.mxu1 %v114_v18 }
  0x38   :  { %187 = vrot.lane.b32.xlu1 %v1185_v8, %s1046_s28 }
  0x39   :  { %990 = vset.pattern.permute.xlu1 %v1038_v4 }
  0x6d   :  { %v177_v19 = vpop.permute.xlu2 %176 }
  0x6e   :  { %vm178_vm6 = vcmp.eq.s32.totalorder %v177_v19, %v71_v23 }
  0x6f   :  { %v930_v32 = vsel %vm178_vm6, 1.0, %v1039_v7  ;;  %vm324_vm6 = vcmask 613376  }
  0x75   :  { %v183_v24 = vpop.permute.xlu2 %182 }
  0x76   :  { %v185_v37 = vmul.f32 %v930_v32, %v183_v24  ;;  %v318_v32 = vld [vmem:[%s1535_s4 + $0x40] sm:$0xff] }
  0x7e   :  { %v199_v31 = vpop.permute.xlu2 %198 }
  0x85   :  { %v147_v20 = vpop.permute.xlu0 %146 }
  0x86   :  { %vm148_vm5 = vcmp.eq.s32.totalorder %v147_v20, %v71_v23  ;;  %v172_v42 = vpop.permute.xlu2 %171 }
  0x87   :  { %v154_v21 = vpop.permute.xlu1 %153  ;;  %v928_v28 = vsel %vm148_vm5, 1.0, %v1039_v7  ;;  %v174_v45 = vadd.f32 %v1185_v8, %v172_v42  ;;  %v314_v42 = vld [vmem:[%s1535_s4 + $0x20] sm:$0xff]  ;;  %vm306_vm5 = vcmask 203776  }
  0x88   :  { %v156_v30 = vmul.f32 %v928_v28, %v154_v21  ;;  %v416_v28 = vld [vmem:[%s1565_s27 + $0x48] sm:$0x7] }
  0x89   :  { %937 = vmatpush.msk.msrb.mxu1 %vm328_vm3, %v416_v28 }
  0x8e   :  { %v161_v25 = vpop.permute.xlu0 %160  ;;  %v204_v47 = vpop.permute.xlu2 %203 }
  0x8f   :  { %vm162_vm4 = vcmp.eq.s32.totalorder %v161_v25, %v71_v23 }
  0x90   :  { %v167_v26 = vpop.permute.xlu1 %166  ;;  %v929_v27 = vsel %vm162_vm4, 1.0, %v1039_v7  ;;  %vm308_vm4 = vcmask 408576  }
  0x91   :  { %v169_v29 = vmul.f32 %v929_v27, %v167_v26 }
  0x93   :  { %v170_v34 = vadd.f32 %v169_v29, %v156_v30  ;;  %v415_v29 = vld [vmem:[%s1565_s27 + $0x40] sm:$0xff]  ;;  %v319_v30 = vld [vmem:[%s1535_s4 + $0x48] sm:$0x7] }
  0x94   :  { %934 = vmatpush.msk.msra.mxu3 %vm328_vm3, %v319_v30  ;;  %434 = vmatpush.msrb.mxu1 %v415_v29 }
  0x95   :  { %v186_v39 = vadd.f32 %v185_v37, %v170_v34  ;;  %v413_v34 = vld [vmem:[%s1565_s27 + $0x30] sm:$0xff]  ;;  %v411_v37 = vld [vmem:[%s1565_s27 + $0x20] sm:$0xff] }
  0x96   :  { %339 = vmatpush.msra.mxu3 %v318_v32 }
  0x97   :  { %v74_v33 = vpop.permute.xlu0 %73 }
  0x98   :  { %vm75_vm8 = vcmp.eq.s32.totalorder %v74_v33, %v71_v23  ;;  %v317_v33 = vld [vmem:[%s1535_s4 + $0x38] sm:$0xff] }
  0x99   :  { %v921_v35 = vsel %vm75_vm8, 1.0, %v1039_v7  ;;  %v193_v36 = vpop.permute.xlu1 %192  ;;  %340 = vmatpush.msra.mxu3 %v317_v33  ;;  %vm369_vm8 = vcmask 785408  }
  0x9a   :  { %vm194_vm9 = vcmp.eq.s32.totalorder %v193_v36, %v71_v23  ;;  %923 = vmatmul.msk.f32.vlgmr.msra.gmra.mxu0 %vm80_vm7, %v921_v35  ;;  %v316_v35 = vld [vmem:[%s1535_s4 + $0x30] sm:$0xff]  ;;  %v412_v36 = vld [vmem:[%s1565_s27 + $0x28] sm:$0xff] }
  0x9b   :  { %v931_v38 = vsel %vm194_vm9, 1.0, %v1039_v7  ;;  %341 = vmatpush.msra.mxu3 %v316_v35  ;;  %vm555_vm9 = vcmask 72752  }
  0x9c   :  { %v201_v40 = vmul.f32 %v931_v38, %v199_v31  ;;  %v414_v31 = vld [vmem:[%s1565_s27 + $0x38] sm:$0xff] }
  0x9d   :  { %435 = vmatpush.msrb.mxu1 %v414_v31  ;;  %v410_v38 = vld [vmem:[%s1565_s27 + $0x18] sm:$0xff] }
  0x9e   :  { %v202_v41 = vadd.f32 %v201_v40, %v186_v39  ;;  %v409_v39 = vld [vmem:[%s1565_s27 + $0x10] sm:$0xff]  ;;  %v315_v40 = vld [vmem:[%s1535_s4 + $0x28] sm:$0xff] }
  0x9f   :  { %436 = vmatpush.msrb.mxu1 %v413_v34  ;;  %342 = vmatpush.msra.mxu3 %v315_v40 }
  0xa0   :  { %933 = vmatmul.msk.f32.vlgmr.msra.gmra.mxu2 %vm209_vm10, %v202_v41  ;;  %v408_v41 = vld [vmem:[%s1565_s27 + $0x8] sm:$0xff]  ;;  %vm513_vm10 = vcmask 48152  }
  0xa1   :  { %437 = vmatpush.msrb.mxu1 %v412_v36  ;;  %343 = vmatpush.msra.mxu3 %v314_v42  ;;  %v1057_v42 = vmov 7  }
  0xa2   :  { %v110_v43 = vpop.permute.xlu1 %109 }
  0xa3   :  { %vm111_vm11 = vcmp.eq.s32.totalorder %v110_v43, %v71_v23  ;;  %438 = vmatpush.msrb.mxu1 %v411_v37  ;;  %v407_v43 = vld [vmem:[%s1565_s27] sm:$0xff] }
  0xa4   :  { %v924_v44 = vsel %vm111_vm11, 1.0, %v1039_v7  ;;  %vm475_vm11 = vcmask 23552  }
  0xa5   :  { %926 = vmatmul.msk.f32.vlgmr.msra.gmra.mxu1 %vm80_vm7, %v924_v44  ;;  %v313_v44 = vld [vmem:[%s1535_s4 + $0x18] sm:$0xff]  ;;  %vm451_vm7 = vcmask 195584  }
  0xa6   :  { %439 = vmatpush.msrb.mxu1 %v410_v38  ;;  %344 = vmatpush.msra.mxu3 %v313_v44 }
  0xa8   :  { %440 = vmatpush.msrb.mxu1 %v409_v39 }
  0xaa   :  { %v188_v46 = vpop.permute.xlu1 %187  ;;  %441 = vmatpush.msrb.mxu1 %v408_v41 }
  0xab   :  { %v190_v48 = vadd.f32 %v188_v46, %v174_v45  ;;  %v312_v45 = vld [vmem:[%s1535_s4 + $0x10] sm:$0xff]  ;;  %v311_v46 = vld [vmem:[%s1535_s4 + $0x8] sm:$0xff] }
  0xac   :  { %442 = vmatpush.msrb.mxu1 %v407_v43  ;;  %345 = vmatpush.msra.mxu3 %v312_v45 }
  0xad   :  { %v206_v49 = vadd.f32 %v204_v47, %v190_v48  ;;  %v310_v47 = vld [vmem:[%s1535_s4] sm:$0xff]  ;;  %v364_v48 = vld [vmem:[%s1536_s6 + $0x58] sm:$0xff]  ;;  %s1062_s4 = smov 16  }
  0xae   :  { %346 = vmatpush.msra.mxu3 %v311_v46  ;;  %377 = vmatpush.msrb.mxu0 %v364_v48 }
  0xaf   :  { %v237_v50 = vmax.f32 %v206_v49, 1.0  ;;  %v363_v49 = vld [vmem:[%s1536_s6 + $0x50] sm:$0xff] }
  0xb0   :  { %347 = vmatpush.msra.mxu3 %v310_v47  ;;  %378 = vmatpush.msrb.mxu0 %v363_v49  ;;  %v1058_v49 = vmov 8  }
  0xb1   :  { %240 = vperm.xlu0 %987, %v237_v50   ;;  %v450_v50 = vld [vmem:[%s1537_s10 + $0x10] sm:$0xff] }
  0xb2   :  { %468 = vmatpush.msrb.mxu2 %v450_v50  ;;  %v1059_v50 = vmov 2  }
  0xb9   :  { %989 = vset.pattern.permute.xlu0 %v1057_v42 }
 0x117   :  { %v105_v51 = vpop.f32.mrf.mxu0 }
 0x118   :  { %286 = vrot.lane.b32.xlu2 %v105_v51, %s1047_s0  ;;  %277 = vrot.lane.b32.xlu1 %v105_v51, %s1048_s9 }
 0x120   :  { %263 = vrot.lane.b32.xlu2 %v1177_v1, %s1049_s30 }
 0x122   :  { %v139_v52 = vpop.f32.mrf.mxu1 }
 0x123   :  { %289 = vrot.lane.b32.xlu1 %v139_v52, %s1048_s9  ;;  %v241_v53 = vpop.permute.xlu0 %240  ;;  %v234_v63 = vpop.f32.mrf.mxu2 }
 0x124   :  { %1011 = vrcp.f32 %v241_v53  ;;  %v254_v57 = vand.u32 2147483648, %v241_v53  ;;  %v252_v59 = vand.u32 2147483647, %v241_v53  ;;  %vm248_vm13 = vweird.f32 %v241_v53 }
 0x126   :  { %v255_v61 = vor.u32 1.1754944e-38, %v254_v57  ;;  %vm253_vm15 = vcmp.eq.f32.partialorder %v252_v59, 8.507059e+37 }
 0x128   :  { %259 = vrot.lane.b32.xlu2 %v139_v52, %s1050_s8  ;;  %s1566_s8 = sld [smem:[#allocation6_spill]] }
 0x12a   :  { %v1012_v54 = vpop.eup %1011 }
 0x12b   :  { %v244_v55 = vmul.f32 %v1012_v54, %v241_v53  ;;  %vm249_vm12 = vweird.f32 %v1012_v54 }
 0x12c   :  { %vm250_vm14 = vmor %vm248_vm13, %vm249_vm12  ;;  %vm606_vm12 = vcmask 261120   ;;  %vm618_vm13 = vcmask 392192  }
 0x12d   :  { %v245_v56 = vsub.f32 1.0, %v244_v55 }
 0x12f   :  { %v246_v58 = vmul.f32 %v1012_v54, %v245_v56 }
 0x131   :  { %v247_v60 = vadd.f32 %v1012_v54, %v246_v58 }
 0x133   :  { %v251_v62 = vsel %vm250_vm14, %v1012_v54, %v247_v60  ;;  %v361_v60 = vld [vmem:[%s1536_s6 + $0x40] sm:$0xff] }
 0x134   :  { %v256_v1 = vsel %vm253_vm15, %v255_v61, %v251_v62  ;;  %v449_v61 = vld [vmem:[%s1537_s10 + $0x8] sm:$0xff]  ;;  %v360_v62 = vld [vmem:[%s1536_s6 + $0x38] sm:$0xff] }
 0x135   :  { %v257_v2 = vmul.f32 %v256_v1, %v234_v63  ;;  %469 = vmatpush.msrb.mxu2 %v449_v61  ;;  %v448_v63 = vld [vmem:[%s1537_s10] sm:$0xff]  ;;  %v359_v1 = vld [vmem:[%s1536_s6 + $0x30] sm:$0xff] }
 0x137   :  { %292 = vrot.lane.b32.xlu1 %v257_v2, %s1051_s22  ;;  %280 = vrot.lane.b32.xlu0 %v257_v2, %s1052_s23 }
 0x138   :  { %470 = vmatpush.msrb.mxu2 %v448_v63 }
 0x13f   :  { %267 = vrot.lane.b32.xlu0 %v257_v2, %s1053_s1  ;;  %v358_v2 = vld [vmem:[%s1536_s6 + $0x28] sm:$0xff] }
 0x172   :  { %v287_v3 = vpop.permute.xlu2 %286 }
 0x17a   :  { %v264_v5 = vpop.permute.xlu2 %263 }
 0x182   :  { %v260_v6 = vpop.permute.xlu2 %259 }
 0x183   :  { %v271_v7 = vsel %vm270_vm0, %v105_v51, %v260_v6  ;;  %v362_v51 = vld [vmem:[%s1536_s6 + $0x48] sm:$0xff]  ;;  %v355_v6 = vld [vmem:[%s1536_s6 + $0x10] sm:$0xff] }
 0x184   :  { %v273_v8 = vsel %vm272_vm1, %v271_v7, %v264_v5  ;;  %379 = vmatpush.msrb.mxu0 %v362_v51  ;;  %v354_v7 = vld [vmem:[%s1536_s6 + $0x8] sm:$0xff] }
 0x186   :  { %380 = vmatpush.msrb.mxu0 %v361_v60 }
 0x188   :  { %381 = vmatpush.msrb.mxu0 %v360_v62 }
 0x18a   :  { %v278_v13 = vpop.permute.xlu1 %277  ;;  %382 = vmatpush.msrb.mxu0 %v359_v1 }
 0x18b   :  { %v283_v15 = vsel %vm270_vm0, %v278_v13, %v139_v52  ;;  %v1004_v13 = vld [vmem:[%s1566_s8] ss:$0 sm:$0xff] }
 0x18c   :  { %v284_v20 = vsel %vm272_vm1, %v283_v15, %v264_v5  ;;  %383 = vmatpush.msrb.mxu0 %v358_v2 }
 0x195   :  { %v290_v14 = vpop.permute.xlu1 %289 }
 0x196   :  { %v295_v16 = vsel %vm270_vm0, %v287_v3, %v290_v14  ;;  %v357_v3 = vld [vmem:[%s1536_s6 + $0x20] sm:$0xff] }
 0x197   :  { %v296_v18 = vsel %vm272_vm1, %v295_v16, %v264_v5  ;;  %v356_v5 = vld [vmem:[%s1536_s6 + $0x18] sm:$0xff]  ;;  %384 = vmatpush.msrb.mxu0 %v357_v3 }
 0x199   :  { %385 = vmatpush.msrb.mxu0 %v356_v5 }
 0x19b   :  { %386 = vmatpush.msrb.mxu0 %v355_v6 }
 0x19d   :  { %387 = vmatpush.msrb.mxu0 %v354_v7 }
 0x1a9   :  { %v281_v17 = vpop.permute.xlu0 %280  ;;  %v293_v19 = vpop.permute.xlu1 %292 }
 0x1aa   :  { %v297_v21 = vsel %vm274_vm2, %v296_v18, %v293_v19  ;;  %v285_v22 = vsel %vm274_vm2, %v284_v20, %v281_v17  ;;  %v1005_v17 = vld [vmem:[%s1538_s5] ss:$0 sm:$0xff]  ;;  %s1056_s5 = smov 122  }
 0x1ab   :  { %299 = vrot.lane.b32.xlu0 %v285_v22, %s1054_s24  ;;  %v395_v23 = vadd.f32 %v297_v21, %v285_v22  ;;  %v396_v24 = vadd.f32 %v297_v21, %v297_v21 }
 0x1ad   :  { %402 = vrot.lane.b32.xlu2 %v396_v24, %s1055_s3  ;;  %398 = vrot.lane.b32.xlu1 %v395_v23, %s1054_s24  ;;  %s1060_s24 = smov 96  }
 0x1b1   :  { %v268_v25 = vpop.permute.xlu0 %267 }
 0x1b2   :  { %v1239_v26 = vsel %vm274_vm2, %v273_v8, %v268_v25  ;;  %v353_v8 = vld [vmem:[%s1536_s6] sm:$0xff]  ;;  %vm915_vm2 = vcmask 15360  }
 0x1b3   :  { %v394_v27 = vadd.f32 %v297_v21, %v1239_v26  ;;  %388 = vmatpush.msrb.mxu0 %v353_v8 }
 0x1b5   :  { %303 = vrot.lane.b32.xlu1 %v297_v21, %s1055_s3 }
 0x207   :  { %v403_v53 = vpop.permute.xlu2 %402 }
 0x21d   :  { %v300_v56 = vpop.permute.xlu0 %299 }
 0x21e   :  { %v307_v57 = vsel %vm306_vm5, %v1239_v26, %v300_v56 }
 0x21f   :  { %v399_v52 = vpop.permute.xlu1 %398 }
 0x220   :  { %v405_v54 = vsel %vm306_vm5, %v394_v27, %v399_v52 }
 0x221   :  { %v406_v55 = vsel %vm308_vm4, %v405_v54, %v403_v53 }
 0x222   :  { %938 = vmatmul.msk.f32.vlgmr.msrb.gmra.mxu1 %vm324_vm6, %v406_v55 }
 0x227   :  { %v304_v58 = vpop.permute.xlu1 %303 }
 0x228   :  { %v309_v59 = vsel %vm308_vm4, %v307_v57, %v304_v58 }
 0x229   :  { %935 = vmatmul.msk.f32.vlgmr.msra.gmra.mxu3 %vm324_vm6, %v309_v59 }
 0x29f   :  { %v444_v14 = vpop.f32.mrf.mxu1 }
 0x2a0   :  { %v445_v15 = vadd.f32 %v1004_v13, %v444_v14 }
 0x2a2   :  { %v447_v16 = vmax.f32 %v445_v15, 0.0 }
 0x2a4   :  { %939 = vmatmul.msk.f32.vlgmr.msrb.gmra.mxu2 %vm451_vm7, %v447_v16 }
 0x2ac   :  { %v349_v18 = vpop.f32.mrf.mxu3 }
 0x2ad   :  { %v350_v19 = vadd.f32 %v1005_v17, %v349_v18 }
 0x2af   :  { %v352_v20 = vmax.f32 %v350_v19, 0.0 }
 0x2b1   :  { %936 = vmatmul.msk.f32.vlgmr.msrb.gmra.mxu0 %vm369_vm8, %v352_v20 }
 0x327   :  { %v472_v21 = vpop.f32.mrf.mxu2 }
 0x328   :  { %v556_v22 = vsel %vm555_vm9, %v472_v21, -inf  ;;  %v514_v23 = vsel %vm513_vm10, %v472_v21, -inf  ;;  %v476_v32 = vsel %vm475_vm11, %v472_v21, -inf }
 0x329   :  { %557 = vmax.xlane.f32.xlu0 %v556_v22  ;;  %515 = vmax.xlane.f32.xlu2 %v514_v23  ;;  %v701_v23 = vld [vmem:[%s1541_s15 + $0x28] sm:$0xff] }
 0x32a   :  { %719 = vmatpush.msra.mxu1 %v701_v23 }
 0x32e   :  { %v390_v54 = vpop.f32.mrf.mxu0 }
 0x39c   :  { %v516_v24 = vpop.xlane.xlu2 %515  ;;  %v558_v26 = vpop.xlane.xlu0 %557 }
 0x39d   :  { %v517_v25 = vsub.f32 %v472_v21, %v516_v24  ;;  %v559_v28 = vsub.f32 %v472_v21, %v558_v26  ;;  %v700_v24 = vld [vmem:[%s1541_s15 + $0x20] sm:$0xff]  ;;  %v698_v26 = vld [vmem:[%s1541_s15 + $0x10] sm:$0xff] }
 0x39e   :  { %720 = vmatpush.msra.mxu1 %v700_v24 }
 0x39f   :  { %v518_v27 = vmul.f32 1.442695, %v517_v25  ;;  %v560_v29 = vmul.f32 1.442695, %v559_v28  ;;  %v699_v25 = vld [vmem:[%s1541_s15 + $0x18] sm:$0xff]  ;;  %v697_v28 = vld [vmem:[%s1541_s15 + $0x8] sm:$0xff] }
 0x3a0   :  { %721 = vmatpush.msra.mxu1 %v699_v25 }
 0x3a1   :  { %1013 = vpow2.f32 %v518_v27  ;;  %v613_v27 = vld [vmem:[%s1542_s11 + $0x28] sm:$0xff] }
 0x3a2   :  { %1015 = vpow2.f32 %v560_v29  ;;  %722 = vmatpush.msra.mxu1 %v698_v26  ;;  %632 = vmatpush.msra.mxu2 %v613_v27  ;;  %v612_v29 = vld [vmem:[%s1542_s11 + $0x20] sm:$0xff] }
 0x3a4   :  { %723 = vmatpush.msra.mxu1 %v697_v28  ;;  %633 = vmatpush.msra.mxu2 %v612_v29 }
 0x3a7   :  { %v1014_v30 = vpop.eup %1013 }
 0x3a8   :  { %521 = vrot.lane.b32.xlu1 %v1014_v30, %s1045_s2  ;;  %v1016_v31 = vpop.eup %1015 }
 0x3b0   :  { %563 = vrot.lane.b32.xlu1 %v1016_v31, %s1056_s5 }
 0x3da   :  { %477 = vmax.xlane.f32.xlu1 %v476_v32  ;;  %v610_v32 = vld [vmem:[%s1542_s11 + $0x10] sm:$0xff] }
 0x41a   :  { %v522_v33 = vpop.permute.xlu1 %521 }
 0x41b   :  { %v524_v34 = vsel %vm475_vm11, %v522_v33, 0.0  ;;  %v609_v33 = vld [vmem:[%s1542_s11 + $0x8] sm:$0xff] }
 0x41c   :  { %525 = vadd.xlane.f32.xlu2 %v524_v34  ;;  %v608_v34 = vld [vmem:[%s1542_s11] sm:$0xff] }
 0x422   :  { %v564_v35 = vpop.permute.xlu1 %563 }
 0x423   :  { %v566_v36 = vsel %vm475_vm11, %v564_v35, 0.0  ;;  %v654_v35 = vld [vmem:[%s1543_s13 + $0x58] sm:$0xff] }
 0x424   :  { %567 = vadd.xlane.f32.xlu2 %v566_v36  ;;  %v653_v36 = vld [vmem:[%s1543_s13 + $0x50] sm:$0xff]  ;;  %666 = vmatpush.msrb.mxu3 %v654_v35 }
 0x426   :  { %667 = vmatpush.msrb.mxu3 %v653_v36 }
 0x44d   :  { %v478_v37 = vpop.xlane.xlu1 %477 }
 0x44e   :  { %v479_v38 = vsub.f32 %v472_v21, %v478_v37  ;;  %v732_v37 = vld [vmem:[%s1544_s17 + $0x10] sm:$0xff] }
 0x450   :  { %v480_v39 = vmul.f32 1.442695, %v479_v38  ;;  %v652_v38 = vld [vmem:[%s1543_s13 + $0x48] sm:$0xff] }
 0x451   :  { %668 = vmatpush.msrb.mxu3 %v652_v38 }
 0x452   :  { %1017 = vpow2.f32 %v480_v39 }
 0x458   :  { %v1018_v40 = vpop.eup %1017 }
 0x459   :  { %v482_v41 = vsel %vm475_vm11, %v1018_v40, 0.0 }
 0x45a   :  { %483 = vadd.xlane.f32.xlu0 %v482_v41 }
 0x48f   :  { %v526_v43 = vpop.xlane.xlu2 %525 }
 0x490   :  { %1019 = vrcp.f32 %v526_v43 }
 0x496   :  { %v1020_v44 = vpop.eup %1019 }
 0x497   :  { %v568_v45 = vpop.xlane.xlu2 %567  ;;  %v528_v46 = vmul.f32 %v1020_v44, %v1014_v30  ;;  %v696_v30 = vld [vmem:[%s1541_s15] sm:$0xff] }
 0x498   :  { %1021 = vrcp.f32 %v568_v45  ;;  %724 = vmatpush.msra.mxu1 %v696_v30 }
 0x499   :  { %536 = vperm.xlu2 %988, %v528_v46   ;;  %546 = vperm.xlu1 %990, %v528_v46  }
 0x49e   :  { %v1022_v47 = vpop.eup %1021 }
 0x49f   :  { %v570_v48 = vmul.f32 %v1022_v47, %v1016_v31  ;;  %v611_v31 = vld [vmem:[%s1542_s11 + $0x18] sm:$0xff] }
 0x4a0   :  { %634 = vmatpush.msra.mxu2 %v611_v31 }
 0x4a1   :  { %991 = vset.pattern.permute.xlu2 %v1058_v49  ;;  %994 = vset.pattern.permute.xlu1 %v1037_v0 }
 0x4a2   :  { %578 = vperm.xlu0 %989, %v570_v48   ;;  %588 = vperm.xlu2 %991, %v570_v48  }
 0x4a3   :  { %531 = vperm.xlu1 %994, %v528_v46   ;;  %635 = vmatpush.msra.mxu2 %v610_v32 }
 0x4a5   :  { %636 = vmatpush.msra.mxu2 %v609_v33  ;;  %v1009_v33 = vld [vmem:[%s1546_s14] ss:$0 sm:$0xff] }
 0x4a7   :  { %637 = vmatpush.msra.mxu2 %v608_v34 }
 0x4a9   :  { %749 = vmatpush.msrb.mxu2 %v732_v37 }
 0x4aa   :  { %992 = vset.pattern.permute.xlu2 %v1044_v12  ;;  %993 = vset.pattern.permute.xlu0 %v1059_v50 }
 0x4ab   :  { %997 = vset.pattern.permute.xlu1 %v1040_v9  ;;  %v1006_v9 = vld [vmem:[%s1539_s7] ss:$0 sm:$0xff]  ;;  %s1061_s7 = smov 32  }
 0x4ac   :  { %v391_v55 = vadd.f32 %v1006_v9, %v390_v54  ;;  %v651_v54 = vld [vmem:[%s1543_s13 + $0x40] sm:$0xff] }
 0x4ad   :  { %669 = vmatpush.msrb.mxu3 %v651_v54 }
 0x4ae   :  { %v1373_v56 = vmax.f32 %v391_v55, 0.0  ;;  %v731_v55 = vld [vmem:[%s1544_s17 + $0x8] sm:$0xff] }
 0x4af   :  { %750 = vmatpush.msrb.mxu2 %v731_v55 }
 0x4cd   :  { %v484_v51 = vpop.xlane.xlu0 %483 }
 0x4ce   :  { %1023 = vrcp.f32 %v484_v51 }
 0x4d4   :  { %v1024_v52 = vpop.eup %1023 }
 0x4d5   :  { %v486_v53 = vmul.f32 %v1024_v52, %v1018_v40 }
 0x4d7   :  { %504 = vperm.xlu0 %993, %v486_v53   ;;  %494 = vperm.xlu2 %992, %v486_v53  }
 0x4df   :  { %996 = vset.pattern.permute.xlu0 %v1042_v11  ;;  %995 = vset.pattern.permute.xlu2 %v1041_v10 }
 0x4e0   :  { %489 = vperm.xlu0 %996, %v486_v53   ;;  %573 = vperm.xlu2 %995, %v570_v48  }
 0x4e8   :  { %999 = vset.pattern.permute.xlu0 %v1044_v12  ;;  %998 = vset.pattern.permute.xlu2 %v1038_v4 }
 0x4f3   :  { %v537_v57 = vpop.permute.xlu2 %536 }
 0x4f4   :  { %v539_v58 = vmul.f32 %v537_v57, %v1373_v56  ;;  %v730_v57 = vld [vmem:[%s1544_s17] sm:$0xff] }
 0x4f5   :  { %751 = vmatpush.msrb.mxu2 %v730_v57 }
 0x4f6   :  { %541 = vrot.lane.b32.xlu1 %v539_v58, %s1047_s0  ;;  %v649_v58 = vld [vmem:[%s1543_s13 + $0x30] sm:$0xff] }
 0x4fc   :  { %v589_v61 = vpop.permute.xlu2 %588 }
 0x4fd   :  { %v591_v62 = vmul.f32 %v589_v61, %v1373_v56  ;;  %v644_v61 = vld [vmem:[%s1543_s13 + $0x8] sm:$0xff] }
 0x50b   :  { %v547_v10 = vpop.permute.xlu1 %546 }
 0x50c   :  { %v549_v59 = vmul.f32 %v547_v10, %v1373_v56  ;;  %v648_v10 = vld [vmem:[%s1543_s13 + $0x28] sm:$0xff] }
 0x50e   :  { %551 = vrot.lane.b32.xlu1 %v549_v59, %s1060_s24  ;;  %v647_v59 = vld [vmem:[%s1543_s13 + $0x20] sm:$0xff] }
 0x514   :  { %v579_v12 = vpop.permute.xlu0 %578 }
 0x515   :  { %v581_v60 = vmul.f32 %v579_v12, %v1373_v56  ;;  %v532_v6 = vpop.permute.xlu1 %531  ;;  %v646_v12 = vld [vmem:[%s1543_s13 + $0x18] sm:$0xff] }
 0x516   :  { %v534_v18 = vmul.f32 %v532_v6, %v1373_v56 }
 0x517   :  { %583 = vrot.lane.b32.xlu2 %v581_v60, %s1047_s0  ;;  %v645_v60 = vld [vmem:[%s1543_s13 + $0x10] sm:$0xff] }
 0x51f   :  { %593 = vrot.lane.b32.xlu2 %v591_v62, %s1060_s24  ;;  %v643_v62 = vld [vmem:[%s1543_s13] sm:$0xff] }
 0x531   :  { %v495_v63 = vpop.permute.xlu2 %494 }
 0x532   :  { %v497_v1 = vmul.f32 %v495_v63, %v1373_v56  ;;  %v1007_v63 = vld [vmem:[%s1540_s16] ss:$0 sm:$0xff] }
 0x534   :  { %499 = vrot.lane.b32.xlu1 %v497_v1, %s1047_s0 }
 0x53a   :  { %v574_v5 = vpop.permute.xlu2 %573 }
 0x53b   :  { %v576_v8 = vmul.f32 %v574_v5, %v1373_v56  ;;  %v1008_v5 = vld [vmem:[%s1545_s12] ss:$0 sm:$0xff] }
 0x549   :  { %v505_v2 = vpop.permute.xlu0 %504 }
 0x54a   :  { %v507_v3 = vmul.f32 %v505_v2, %v1373_v56 }
 0x54c   :  { %509 = vrot.lane.b32.xlu2 %v507_v3, %s1060_s24 }
 0x552   :  { %v490_v39 = vpop.permute.xlu0 %489 }
 0x553   :  { %v492_v41 = vmul.f32 %v490_v39, %v1373_v56  ;;  %v650_v56 = vld [vmem:[%s1543_s13 + $0x38] sm:$0xff] }
 0x554   :  { %670 = vmatpush.msrb.mxu3 %v650_v56 }
 0x556   :  { %671 = vmatpush.msrb.mxu3 %v649_v58 }
 0x558   :  { %672 = vmatpush.msrb.mxu3 %v648_v10 }
 0x55a   :  { %673 = vmatpush.msrb.mxu3 %v647_v59  ;;  %v871_v59 = vld [vmem:[%s1549_s20] sm:$0xff] }
 0x55c   :  { %674 = vmatpush.msrb.mxu3 %v646_v12  ;;  %v1010_v12 = vld [vmem:[%s1548_s19] ss:$0 sm:$0xff] }
 0x55e   :  { %675 = vmatpush.msrb.mxu3 %v645_v60 }
 0x560   :  { %676 = vmatpush.msrb.mxu3 %v644_v61 }
 0x562   :  { %677 = vmatpush.msrb.mxu3 %v643_v62 }
 0x568   :  { %v542_v13 = vpop.permute.xlu1 %541 }
 0x569   :  { %v544_v19 = vadd.f32 %v542_v13, %v534_v18 }
 0x571   :  { %v584_v7 = vpop.permute.xlu2 %583 }
 0x572   :  { %v586_v14 = vadd.f32 %v584_v7, %v576_v8 }
 0x579   :  { %v594_v15 = vpop.permute.xlu2 %593 }
 0x57a   :  { %v596_v16 = vadd.f32 %v594_v15, %v586_v14 }
 0x57c   :  { %v685_v17 = vadd.f32 %v596_v16, %v596_v16 }
 0x57e   :  { %691 = vrot.lane.b32.xlu2 %v685_v17, %s1061_s7 }
 0x580   :  { %v552_v20 = vpop.permute.xlu1 %551 }
 0x581   :  { %v554_v21 = vadd.f32 %v552_v20, %v544_v19 }
 0x583   :  { %v684_v22 = vadd.f32 %v596_v16, %v554_v21  ;;  %598 = vrot.lane.b32.xlu0 %v554_v21, %s1062_s4 }
 0x585   :  { %687 = vrot.lane.b32.xlu1 %v684_v22, %s1062_s4 }
 0x58d   :  { %602 = vrot.lane.b32.xlu1 %v596_v16, %s1061_s7 }
 0x5a6   :  { %v500_v40 = vpop.permute.xlu1 %499  ;;  %v510_v43 = vpop.permute.xlu2 %509 }
 0x5a7   :  { %v502_v42 = vadd.f32 %v500_v40, %v492_v41  ;;  %v842_v41 = vld [vmem:[%s1547_s18 + $0x18] sm:$0xff] }
 0x5a8   :  { %862 = vmatpush.msra.mxu0 %v842_v41 }
 0x5a9   :  { %v512_v44 = vadd.f32 %v510_v43, %v502_v42  ;;  %v841_v42 = vld [vmem:[%s1547_s18 + $0x10] sm:$0xff]  ;;  %v840_v43 = vld [vmem:[%s1547_s18 + $0x8] sm:$0xff] }
 0x5aa   :  { %863 = vmatpush.msra.mxu0 %v841_v42 }
 0x5ab   :  { %v683_v45 = vadd.f32 %v596_v16, %v512_v44 }
 0x5ac   :  { %864 = vmatpush.msra.mxu0 %v840_v43 }
 0x5d8   :  { %v692_v47 = vpop.permute.xlu2 %691 }
 0x5f5   :  { %v599_v51 = vpop.permute.xlu0 %598 }
 0x5f6   :  { %v605_v52 = vsel %vm272_vm1, %v512_v44, %v599_v51  ;;  %v839_v44 = vld [vmem:[%s1547_s18] sm:$0xff] }
 0x5f7   :  { %v688_v46 = vpop.permute.xlu1 %687  ;;  %865 = vmatpush.msra.mxu0 %v839_v44 }
 0x5f8   :  { %v694_v48 = vsel %vm272_vm1, %v683_v45, %v688_v46 }
 0x5f9   :  { %v695_v49 = vsel %vm606_vm12, %v694_v48, %v692_v47 }
 0x5fa   :  { %942 = vmatmul.msk.f32.vlgmr.msra.gmra.mxu1 %vm618_vm13, %v695_v49 }
 0x5ff   :  { %v603_v53 = vpop.permute.xlu1 %602 }
 0x600   :  { %v607_v9 = vsel %vm606_vm12, %v605_v52, %v603_v53  ;;  %v872_v52 = vld [vmem:[%s1549_s20 + $0x8] sm:$0xff] }
 0x601   :  { %940 = vmatmul.msk.f32.vlgmr.msra.gmra.mxu2 %vm618_vm13, %v607_v9 }
 0x602   :  { %890 = vmatpush.msra.mxu2 %v872_v52 }
 0x604   :  { %891 = vmatpush.msra.mxu2 %v871_v59 }
 0x677   :  { %v726_v1 = vpop.f32.mrf.mxu1 }
 0x678   :  { %v727_v2 = vadd.f32 %v1007_v63, %v726_v1 }
 0x67a   :  { %v729_v3 = vmax.f32 %v727_v2, 0.0 }
 0x67c   :  { %943 = vmatmul.msk.f32.vlgmr.msrb.gmra.mxu2 %vm451_vm7, %v729_v3 }
 0x684   :  { %v639_v6 = vpop.f32.mrf.mxu2 }
 0x685   :  { %v640_v7 = vadd.f32 %v1008_v5, %v639_v6 }
 0x687   :  { %v642_v8 = vmax.f32 %v640_v7, 0.0 }
 0x689   :  { %941 = vmatmul.msk.f32.vlgmr.msrb.gmra.mxu3 %vm369_vm8, %v642_v8 }
 0x6ff   :  { %v753_v13 = vpop.f32.mrf.mxu2 }
 0x700   :  { %v793_v14 = vsel %vm513_vm10, %v753_v13, -inf  ;;  %v756_v15 = vsel %vm475_vm11, %v753_v13, -inf }
 0x701   :  { %794 = vmax.xlane.f32.xlu2 %v793_v14  ;;  %757 = vmax.xlane.f32.xlu1 %v756_v15 }
 0x70c   :  { %v679_v34 = vpop.f32.mrf.mxu3 }
 0x774   :  { %v795_v16 = vpop.xlane.xlu2 %794  ;;  %v758_v17 = vpop.xlane.xlu1 %757 }
 0x775   :  { %v796_v18 = vsub.f32 %v753_v13, %v795_v16  ;;  %v759_v19 = vsub.f32 %v753_v13, %v758_v17 }
 0x777   :  { %v797_v20 = vmul.f32 1.442695, %v796_v18  ;;  %v760_v21 = vmul.f32 1.442695, %v759_v19 }
 0x779   :  { %1025 = vpow2.f32 %v797_v20 }
 0x77a   :  { %1027 = vpow2.f32 %v760_v21 }
 0x77f   :  { %v1026_v22 = vpop.eup %1025 }
 0x780   :  { %v1028_v23 = vpop.eup %1027  ;;  %800 = vrot.lane.b32.xlu0 %v1026_v22, %s1045_s2 }
 0x781   :  { %v762_v24 = vsel %vm475_vm11, %v1028_v23, 0.0 }
 0x782   :  { %763 = vadd.xlane.f32.xlu2 %v762_v24 }
 0x7f2   :  { %v801_v25 = vpop.permute.xlu0 %800 }
 0x7f3   :  { %v803_v26 = vsel %vm475_vm11, %v801_v25, 0.0 }
 0x7f4   :  { %804 = vadd.xlane.f32.xlu0 %v803_v26 }
 0x7f5   :  { %v764_v27 = vpop.xlane.xlu2 %763 }
 0x7f6   :  { %1029 = vrcp.f32 %v764_v27 }
 0x7fc   :  { %v1030_v28 = vpop.eup %1029 }
 0x7fd   :  { %v766_v29 = vmul.f32 %v1030_v28, %v1028_v23 }
 0x808   :  { %774 = vperm.xlu0 %999, %v766_v29  }
 0x810   :  { %1003 = vset.pattern.permute.xlu0 %v1038_v4  ;;  %v680_v4 = vadd.f32 %v1009_v33, %v679_v34 }
 0x812   :  { %v682_v35 = vmax.f32 %v680_v4, 0.0 }
 0x867   :  { %v805_v30 = vpop.xlane.xlu0 %804 }
 0x868   :  { %1031 = vrcp.f32 %v805_v30 }
 0x86e   :  { %v1032_v31 = vpop.eup %1031 }
 0x86f   :  { %v807_v32 = vmul.f32 %v1032_v31, %v1026_v22 }
 0x871   :  { %815 = vperm.xlu1 %997, %v807_v32   ;;  %825 = vperm.xlu2 %998, %v807_v32  }
 0x879   :  { %1001 = vset.pattern.permute.xlu1 %v1037_v0  ;;  %1000 = vset.pattern.permute.xlu2 %v1059_v50 }
 0x87a   :  { %810 = vperm.xlu1 %1001, %v807_v32   ;;  %784 = vperm.xlu2 %1000, %v766_v29   ;;  %v775_v38 = vpop.permute.xlu0 %774 }
 0x87b   :  { %v777_v39 = vmul.f32 %v775_v38, %v682_v35 }
 0x882   :  { %1002 = vset.pattern.permute.xlu1 %v1042_v11 }
 0x8cb   :  { %v826_v36 = vpop.permute.xlu2 %825 }
 0x8cc   :  { %v828_v37 = vmul.f32 %v826_v36, %v682_v35 }
 0x8ce   :  { %830 = vrot.lane.b32.xlu2 %v828_v37, %s1060_s24 }
 0x8d4   :  { %v785_v0 = vpop.permute.xlu2 %784 }
 0x8d5   :  { %v787_v40 = vmul.f32 %v785_v0, %v682_v35 }
 0x8d6   :  { %779 = vrot.lane.b32.xlu2 %v777_v39, %s1047_s0 }
 0x8d7   :  { %789 = vrot.lane.b32.xlu0 %v787_v40, %s1060_s24 }
 0x8e3   :  { %v816_v11 = vpop.permute.xlu1 %815 }
 0x8e4   :  { %v818_v50 = vmul.f32 %v816_v11, %v682_v35 }
 0x8e6   :  { %820 = vrot.lane.b32.xlu1 %v818_v50, %s1047_s0 }
 0x8ec   :  { %v811_v45 = vpop.permute.xlu1 %810 }
 0x8ed   :  { %v813_v46 = vmul.f32 %v811_v45, %v682_v35 }
 0x8ee   :  { %769 = vperm.xlu1 %1002, %v766_v29  }
 0x928   :  { %v831_v49 = vpop.permute.xlu2 %830 }
 0x930   :  { %v780_v54 = vpop.permute.xlu2 %779 }
 0x949   :  { %v790_v56 = vpop.permute.xlu0 %789 }
 0x958   :  { %v821_v47 = vpop.permute.xlu1 %820 }
 0x959   :  { %v823_v48 = vadd.f32 %v821_v47, %v813_v46 }
 0x95b   :  { %v833_v51 = vadd.f32 %v831_v49, %v823_v48 }
 0x95d   :  { %835 = vrot.lane.b32.xlu1 %v833_v51, %s1062_s4 }
 0x960   :  { %v770_v53 = vpop.permute.xlu1 %769 }
 0x961   :  { %v772_v9 = vmul.f32 %v770_v53, %v682_v35 }
 0x963   :  { %v782_v55 = vadd.f32 %v780_v54, %v772_v9 }
 0x965   :  { %v792_v57 = vadd.f32 %v790_v56, %v782_v55 }
 0x9cf   :  { %v836_v58 = vpop.permute.xlu1 %835 }
 0x9d0   :  { %v838_v10 = vsel %vm272_vm1, %v792_v57, %v836_v58 }
 0x9d1   :  { %944 = vmatmul.msk.f32.vlgmr.msra.gmra.mxu0 %vm606_vm12, %v838_v10 }
 0xa4e   :  { %v867_v60 = vpop.f32.mrf.mxu0 }
 0xa4f   :  { %v868_v61 = vadd.f32 %v1010_v12, %v867_v60 }
 0xa51   :  { %v870_v62 = vmax.f32 %v868_v61, 0.0 }
 0xa53   :  { %945 = vmatmul.msk.f32.vlgmr.msra.gmra.mxu2 %vm272_vm1, %v870_v62 }
 0xad6   :  { %v893_v63 = vpop.f32.mrf.mxu2 }
 0xad7   :  { %v946_v1 = vmul.f32 -1.442695, %v893_v63 }
 0xad9   :  { %1033 = vpow2.f32 %v946_v1 }
 0xadf   :  { %v1034_v2 = vpop.eup %1033 }
 0xae0   :  { %v899_v3 = vadd.f32 1.0, %v1034_v2 }
 0xae2   :  { %1035 = vrcp.f32 %v899_v3  ;;  %v911_v8 = vand.u32 2147483648, %v899_v3  ;;  %v909_v14 = vand.u32 2147483647, %v899_v3  ;;  %vm905_vm15 = vweird.f32 %v899_v3 }
 0xae4   :  { %v912_v16 = vor.u32 1.1754944e-38, %v911_v8  ;;  %vm910_vm1 = vcmp.eq.f32.partialorder %v909_v14, 8.507059e+37 }
 0xae8   :  { %v1036_v5 = vpop.eup %1035 }
 0xae9   :  { %v901_v6 = vmul.f32 %v1036_v5, %v899_v3  ;;  %vm906_vm14 = vweird.f32 %v1036_v5 }
 0xaea   :  { %vm907_vm0 = vmor %vm905_vm15, %vm906_vm14 }
 0xaeb   :  { %v902_v7 = vsub.f32 1.0, %v901_v6 }
 0xaed   :  { %v903_v13 = vmul.f32 %v1036_v5, %v902_v7 }
 0xaef   :  { %v904_v15 = vadd.f32 %v1036_v5, %v903_v13 }
 0xaf1   :  { %v908_v17 = vsel %vm907_vm0, %v1036_v5, %v904_v15 }
 0xaf2   :  { %v913_v18 = vsel %vm910_vm1, %v912_v16, %v908_v17 }
 0xaf3   :  { %916 = vst.msk [vmem:[%s1550_s21] sm:$0xff] %vm915_vm2, %v913_v18 }

</bundles_post_ra>
